<compile_context>
chip_gen: v5e
topology: v5e:2x2
jax: 0.10.0
libtpu: 0.0.40
codegen_flags: <defaults>
</compile_context>

<pallas_src>
import jax
import jax.numpy as jnp
from jax import lax
from jax.experimental import pallas as pl
from jax.experimental.pallas import tpu as pltpu


# Static configuration implied by the module / input shape.
_N, _CIN, _D, _H, _W = 2, 1, 4, 4, 4
_COUT, _KD, _KH, _KW = 2, 3, 3, 3
_DO, _HO, _WO = _D - _KD + 1, _H - _KH + 1, _W - _KW + 1   # 2, 2, 2


def _conv3d_tanh_kernel(x_ref, w_ref, b_ref, o_ref):
    """Fused valid 3-D conv (stride 1) + bias + tanh, all on the VPU/EUP.

    x_ref: (N, D, H, W)            VMEM f32 (C_in == 1 squeezed in wrapper)
    w_ref: (COUT*KD*KH*KW,)        SMEM f32, row-major flat weight
    b_ref: (COUT,)                 SMEM f32
    o_ref: (N, COUT, DO, HO, WO)   VMEM f32 (torch conv output layout)
    """
    x = x_ref[...]                                           # one VMEM load

    # Per-output-channel accumulators, bias folded into the init.
    accs = [jnp.full((_N, _DO, _HO, _WO), b_ref[c], dtype=jnp.float32)
            for c in range(_COUT)]

    # In-kernel im2col: only 9 distinct (kh, kw) sublane/lane shifts; the kd
    # offset is a leading-dim slice (pure vreg selection, no relayout).
    for kh in range(_KH):
        for kw in range(_KW):
            shifted = x[:, :, kh:kh + _HO, kw:kw + _WO]      # (N, D, HO, WO)
            for kd in range(_KD):
                patch = shifted[:, kd:kd + _DO]              # (N, DO, HO, WO)
                for c in range(_COUT):
                    w = w_ref[((c * _KD + kd) * _KH + kh) * _KW + kw]
                    accs[c] = accs[c] + patch * w            # VPU FMA

    for c in range(_COUT):
        o_ref[:, c, :, :, :] = jnp.tanh(accs[c])             # EUP tanh


@jax.jit
def conv3d_tanh_pallas(x, weight, bias):
    """x: (N, 1, D, H, W) f32; weight: (COUT, 1, 3, 3, 3); bias: (COUT,)."""
    x4 = x.reshape(_N, _D, _H, _W)       # squeeze C_in: contiguous, free
    w_flat = weight.reshape(-1)          # (COUT*KD*KH*KW,), row-major, free

    out5 = pl.pallas_call(
        _conv3d_tanh_kernel,
        out_shape=jax.ShapeDtypeStruct((_N, _COUT, _DO, _HO, _WO), jnp.float32),
        in_specs=[
            pl.BlockSpec(memory_space=pltpu.MemorySpace.VMEM),   # x
            pl.BlockSpec(memory_space=pltpu.MemorySpace.SMEM),   # weights
            pl.BlockSpec(memory_space=pltpu.MemorySpace.SMEM),   # bias
        ],
        out_specs=pl.BlockSpec(memory_space=pltpu.MemorySpace.VMEM),
    )(x4, w_flat, bias)

    # torch: conv output (N, COUT, DO, HO, WO) is contiguous, so .view(N, -1)
    # is a plain contiguous reshape — no transpose needed.
    return out5.reshape(_N, _COUT * _DO * _HO * _WO)


if __name__ == "__main__":
    key = jax.random.PRNGKey(0)
    kx, kw, kb = jax.random.split(key, 3)

    # Input matching the PyTorch script: torch.randn(2, 1, 4, 4, 4)
    x = jax.random.normal(kx, (_N, _CIN, _D, _H, _W), dtype=jnp.float32)

    # Deterministic Conv3d(1, 2, 3) parameters (PyTorch-style uniform init).
    fan_in = _CIN * _KD * _KH * _KW
    lim = 1.0 / (fan_in ** 0.5)
    weight = jax.random.uniform(kw, (_COUT, _CIN, _KD, _KH, _KW),
                                jnp.float32, -lim, lim)
    bias = jax.random.uniform(kb, (_COUT,), jnp.float32, -lim, lim)

    y = conv3d_tanh_pallas(x, weight, bias)
    y = jax.block_until_ready(y)

    # Independent reference check (lax conv + tanh).
    ref = lax.conv_general_dilated(
        x, weight, window_strides=(1, 1, 1), padding="VALID",
        dimension_numbers=("NCDHW", "OIDHW", "NCDHW"))
    ref = jnp.tanh(ref + bias.reshape(1, _COUT, 1, 1, 1)).reshape(_N, -1)

    assert y.shape == (_N, _COUT * _DO * _HO * _WO), y.shape
    assert jnp.allclose(y, ref, atol=1e-5, rtol=1e-5)
    print("KERNEL_OK")
</pallas_src>

<mosaic_0001>
module attributes {stable_mosaic.version = 11 : i64} {
  func.func @_conv3d_tanh_kernel(%arg0: memref<2x4x4x4xf32, #tpu.memory_space<vmem>>, %arg1: memref<54xf32, #tpu.memory_space<smem>>, %arg2: memref<2xf32, #tpu.memory_space<smem>>, %arg3: memref<2x2x2x2x2xf32, #tpu.memory_space<vmem>>) attributes {dimension_semantics = [], scalar_prefetch = 0 : i64, scratch_operands = 0 : i64, tpu.core_type = #tpu.core_type<tc>} {
    %c0 = arith.constant 0 : index
    %c0_0 = arith.constant 0 : index
    %c0_1 = arith.constant 0 : index
    %c0_2 = arith.constant 0 : index
    %0 = vector.load %arg0[%c0, %c0_0, %c0_1, %c0_2] : memref<2x4x4x4xf32, #tpu.memory_space<vmem>>, vector<2x4x4x4xf32>
    %c0_3 = arith.constant 0 : index
    %1 = memref.load %arg2[%c0_3] : memref<2xf32, #tpu.memory_space<smem>>
    %2 = vector.broadcast %1 : f32 to vector<2x2x2x2xf32>
    %c1 = arith.constant 1 : index
    %3 = memref.load %arg2[%c1] : memref<2xf32, #tpu.memory_space<smem>>
    %4 = vector.broadcast %3 : f32 to vector<2x2x2x2xf32>
    %5 = vector.extract_strided_slice %0 {offsets = [0, 0, 0, 0], sizes = [2, 4, 2, 2], strides = [1, 1, 1, 1]} : vector<2x4x4x4xf32> to vector<2x4x2x2xf32>
    %6 = vector.extract_strided_slice %5 {offsets = [0, 0, 0, 0], sizes = [2, 2, 2, 2], strides = [1, 1, 1, 1]} : vector<2x4x2x2xf32> to vector<2x2x2x2xf32>
    %c0_4 = arith.constant 0 : index
    %7 = memref.load %arg1[%c0_4] : memref<54xf32, #tpu.memory_space<smem>>
    %8 = vector.broadcast %7 : f32 to vector<2x2x2x2xf32>
    %9 = arith.mulf %6, %8 : vector<2x2x2x2xf32>
    %10 = arith.addf %2, %9 : vector<2x2x2x2xf32>
    %c27 = arith.constant 27 : index
    %11 = memref.load %arg1[%c27] : memref<54xf32, #tpu.memory_space<smem>>
    %12 = vector.broadcast %11 : f32 to vector<2x2x2x2xf32>
    %13 = arith.mulf %6, %12 : vector<2x2x2x2xf32>
    %14 = arith.addf %4, %13 : vector<2x2x2x2xf32>
    %15 = vector.extract_strided_slice %5 {offsets = [0, 1, 0, 0], sizes = [2, 2, 2, 2], strides = [1, 1, 1, 1]} : vector<2x4x2x2xf32> to vector<2x2x2x2xf32>
    %c9 = arith.constant 9 : index
    %16 = memref.load %arg1[%c9] : memref<54xf32, #tpu.memory_space<smem>>
    %17 = vector.broadcast %16 : f32 to vector<2x2x2x2xf32>
    %18 = arith.mulf %15, %17 : vector<2x2x2x2xf32>
    %19 = arith.addf %10, %18 : vector<2x2x2x2xf32>
    %c36 = arith.constant 36 : index
    %20 = memref.load %arg1[%c36] : memref<54xf32, #tpu.memory_space<smem>>
    %21 = vector.broadcast %20 : f32 to vector<2x2x2x2xf32>
    %22 = arith.mulf %15, %21 : vector<2x2x2x2xf32>
    %23 = arith.addf %14, %22 : vector<2x2x2x2xf32>
    %24 = vector.extract_strided_slice %5 {offsets = [0, 2, 0, 0], sizes = [2, 2, 2, 2], strides = [1, 1, 1, 1]} : vector<2x4x2x2xf32> to vector<2x2x2x2xf32>
    %c18 = arith.constant 18 : index
    %25 = memref.load %arg1[%c18] : memref<54xf32, #tpu.memory_space<smem>>
    %26 = vector.broadcast %25 : f32 to vector<2x2x2x2xf32>
    %27 = arith.mulf %24, %26 : vector<2x2x2x2xf32>
    %28 = arith.addf %19, %27 : vector<2x2x2x2xf32>
    %c45 = arith.constant 45 : index
    %29 = memref.load %arg1[%c45] : memref<54xf32, #tpu.memory_space<smem>>
    %30 = vector.broadcast %29 : f32 to vector<2x2x2x2xf32>
    %31 = arith.mulf %24, %30 : vector<2x2x2x2xf32>
    %32 = arith.addf %23, %31 : vector<2x2x2x2xf32>
    %33 = vector.extract_strided_slice %0 {offsets = [0, 0, 0, 1], sizes = [2, 4, 2, 2], strides = [1, 1, 1, 1]} : vector<2x4x4x4xf32> to vector<2x4x2x2xf32>
    %34 = vector.extract_strided_slice %33 {offsets = [0, 0, 0, 0], sizes = [2, 2, 2, 2], strides = [1, 1, 1, 1]} : vector<2x4x2x2xf32> to vector<2x2x2x2xf32>
    %c1_5 = arith.constant 1 : index
    %35 = memref.load %arg1[%c1_5] : memref<54xf32, #tpu.memory_space<smem>>
    %36 = vector.broadcast %35 : f32 to vector<2x2x2x2xf32>
    %37 = arith.mulf %34, %36 : vector<2x2x2x2xf32>
    %38 = arith.addf %28, %37 : vector<2x2x2x2xf32>
    %c28 = arith.constant 28 : index
    %39 = memref.load %arg1[%c28] : memref<54xf32, #tpu.memory_space<smem>>
    %40 = vector.broadcast %39 : f32 to vector<2x2x2x2xf32>
    %41 = arith.mulf %34, %40 : vector<2x2x2x2xf32>
    %42 = arith.addf %32, %41 : vector<2x2x2x2xf32>
    %43 = vector.extract_strided_slice %33 {offsets = [0, 1, 0, 0], sizes = [2, 2, 2, 2], strides = [1, 1, 1, 1]} : vector<2x4x2x2xf32> to vector<2x2x2x2xf32>
    %c10 = arith.constant 10 : index
    %44 = memref.load %arg1[%c10] : memref<54xf32, #tpu.memory_space<smem>>
    %45 = vector.broadcast %44 : f32 to vector<2x2x2x2xf32>
    %46 = arith.mulf %43, %45 : vector<2x2x2x2xf32>
    %47 = arith.addf %38, %46 : vector<2x2x2x2xf32>
    %c37 = arith.constant 37 : index
    %48 = memref.load %arg1[%c37] : memref<54xf32, #tpu.memory_space<smem>>
    %49 = vector.broadcast %48 : f32 to vector<2x2x2x2xf32>
    %50 = arith.mulf %43, %49 : vector<2x2x2x2xf32>
    %51 = arith.addf %42, %50 : vector<2x2x2x2xf32>
    %52 = vector.extract_strided_slice %33 {offsets = [0, 2, 0, 0], sizes = [2, 2, 2, 2], strides = [1, 1, 1, 1]} : vector<2x4x2x2xf32> to vector<2x2x2x2xf32>
    %c19 = arith.constant 19 : index
    %53 = memref.load %arg1[%c19] : memref<54xf32, #tpu.memory_space<smem>>
    %54 = vector.broadcast %53 : f32 to vector<2x2x2x2xf32>
    %55 = arith.mulf %52, %54 : vector<2x2x2x2xf32>
    %56 = arith.addf %47, %55 : vector<2x2x2x2xf32>
    %c46 = arith.constant 46 : index
    %57 = memref.load %arg1[%c46] : memref<54xf32, #tpu.memory_space<smem>>
    %58 = vector.broadcast %57 : f32 to vector<2x2x2x2xf32>
    %59 = arith.mulf %52, %58 : vector<2x2x2x2xf32>
    %60 = arith.addf %51, %59 : vector<2x2x2x2xf32>
    %61 = vector.extract_strided_slice %0 {offsets = [0, 0, 0, 2], sizes = [2, 4, 2, 2], strides = [1, 1, 1, 1]} : vector<2x4x4x4xf32> to vector<2x4x2x2xf32>
    %62 = vector.extract_strided_slice %61 {offsets = [0, 0, 0, 0], sizes = [2, 2, 2, 2], strides = [1, 1, 1, 1]} : vector<2x4x2x2xf32> to vector<2x2x2x2xf32>
    %c2 = arith.constant 2 : index
    %63 = memref.load %arg1[%c2] : memref<54xf32, #tpu.memory_space<smem>>
    %64 = vector.broadcast %63 : f32 to vector<2x2x2x2xf32>
    %65 = arith.mulf %62, %64 : vector<2x2x2x2xf32>
    %66 = arith.addf %56, %65 : vector<2x2x2x2xf32>
    %c29 = arith.constant 29 : index
    %67 = memref.load %arg1[%c29] : memref<54xf32, #tpu.memory_space<smem>>
    %68 = vector.broadcast %67 : f32 to vector<2x2x2x2xf32>
    %69 = arith.mulf %62, %68 : vector<2x2x2x2xf32>
    %70 = arith.addf %60, %69 : vector<2x2x2x2xf32>
    %71 = vector.extract_strided_slice %61 {offsets = [0, 1, 0, 0], sizes = [2, 2, 2, 2], strides = [1, 1, 1, 1]} : vector<2x4x2x2xf32> to vector<2x2x2x2xf32>
    %c11 = arith.constant 11 : index
    %72 = memref.load %arg1[%c11] : memref<54xf32, #tpu.memory_space<smem>>
    %73 = vector.broadcast %72 : f32 to vector<2x2x2x2xf32>
    %74 = arith.mulf %71, %73 : vector<2x2x2x2xf32>
    %75 = arith.addf %66, %74 : vector<2x2x2x2xf32>
    %c38 = arith.constant 38 : index
    %76 = memref.load %arg1[%c38] : memref<54xf32, #tpu.memory_space<smem>>
    %77 = vector.broadcast %76 : f32 to vector<2x2x2x2xf32>
    %78 = arith.mulf %71, %77 : vector<2x2x2x2xf32>
    %79 = arith.addf %70, %78 : vector<2x2x2x2xf32>
    %80 = vector.extract_strided_slice %61 {offsets = [0, 2, 0, 0], sizes = [2, 2, 2, 2], strides = [1, 1, 1, 1]} : vector<2x4x2x2xf32> to vector<2x2x2x2xf32>
    %c20 = arith.constant 20 : index
    %81 = memref.load %arg1[%c20] : memref<54xf32, #tpu.memory_space<smem>>
    %82 = vector.broadcast %81 : f32 to vector<2x2x2x2xf32>
    %83 = arith.mulf %80, %82 : vector<2x2x2x2xf32>
    %84 = arith.addf %75, %83 : vector<2x2x2x2xf32>
    %c47 = arith.constant 47 : index
    %85 = memref.load %arg1[%c47] : memref<54xf32, #tpu.memory_space<smem>>
    %86 = vector.broadcast %85 : f32 to vector<2x2x2x2xf32>
    %87 = arith.mulf %80, %86 : vector<2x2x2x2xf32>
    %88 = arith.addf %79, %87 : vector<2x2x2x2xf32>
    %89 = vector.extract_strided_slice %0 {offsets = [0, 0, 1, 0], sizes = [2, 4, 2, 2], strides = [1, 1, 1, 1]} : vector<2x4x4x4xf32> to vector<2x4x2x2xf32>
    %90 = vector.extract_strided_slice %89 {offsets = [0, 0, 0, 0], sizes = [2, 2, 2, 2], strides = [1, 1, 1, 1]} : vector<2x4x2x2xf32> to vector<2x2x2x2xf32>
    %c3 = arith.constant 3 : index
    %91 = memref.load %arg1[%c3] : memref<54xf32, #tpu.memory_space<smem>>
    %92 = vector.broadcast %91 : f32 to vector<2x2x2x2xf32>
    %93 = arith.mulf %90, %92 : vector<2x2x2x2xf32>
    %94 = arith.addf %84, %93 : vector<2x2x2x2xf32>
    %c30 = arith.constant 30 : index
    %95 = memref.load %arg1[%c30] : memref<54xf32, #tpu.memory_space<smem>>
    %96 = vector.broadcast %95 : f32 to vector<2x2x2x2xf32>
    %97 = arith.mulf %90, %96 : vector<2x2x2x2xf32>
    %98 = arith.addf %88, %97 : vector<2x2x2x2xf32>
    %99 = vector.extract_strided_slice %89 {offsets = [0, 1, 0, 0], sizes = [2, 2, 2, 2], strides = [1, 1, 1, 1]} : vector<2x4x2x2xf32> to vector<2x2x2x2xf32>
    %c12 = arith.constant 12 : index
    %100 = memref.load %arg1[%c12] : memref<54xf32, #tpu.memory_space<smem>>
    %101 = vector.broadcast %100 : f32 to vector<2x2x2x2xf32>
    %102 = arith.mulf %99, %101 : vector<2x2x2x2xf32>
    %103 = arith.addf %94, %102 : vector<2x2x2x2xf32>
    %c39 = arith.constant 39 : index
    %104 = memref.load %arg1[%c39] : memref<54xf32, #tpu.memory_space<smem>>
    %105 = vector.broadcast %104 : f32 to vector<2x2x2x2xf32>
    %106 = arith.mulf %99, %105 : vector<2x2x2x2xf32>
    %107 = arith.addf %98, %106 : vector<2x2x2x2xf32>
    %108 = vector.extract_strided_slice %89 {offsets = [0, 2, 0, 0], sizes = [2, 2, 2, 2], strides = [1, 1, 1, 1]} : vector<2x4x2x2xf32> to vector<2x2x2x2xf32>
    %c21 = arith.constant 21 : index
    %109 = memref.load %arg1[%c21] : memref<54xf32, #tpu.memory_space<smem>>
    %110 = vector.broadcast %109 : f32 to vector<2x2x2x2xf32>
    %111 = arith.mulf %108, %110 : vector<2x2x2x2xf32>
    %112 = arith.addf %103, %111 : vector<2x2x2x2xf32>
    %c48 = arith.constant 48 : index
    %113 = memref.load %arg1[%c48] : memref<54xf32, #tpu.memory_space<smem>>
    %114 = vector.broadcast %113 : f32 to vector<2x2x2x2xf32>
    %115 = arith.mulf %108, %114 : vector<2x2x2x2xf32>
    %116 = arith.addf %107, %115 : vector<2x2x2x2xf32>
    %117 = vector.extract_strided_slice %0 {offsets = [0, 0, 1, 1], sizes = [2, 4, 2, 2], strides = [1, 1, 1, 1]} : vector<2x4x4x4xf32> to vector<2x4x2x2xf32>
    %118 = vector.extract_strided_slice %117 {offsets = [0, 0, 0, 0], sizes = [2, 2, 2, 2], strides = [1, 1, 1, 1]} : vector<2x4x2x2xf32> to vector<2x2x2x2xf32>
    %c4 = arith.constant 4 : index
    %119 = memref.load %arg1[%c4] : memref<54xf32, #tpu.memory_space<smem>>
    %120 = vector.broadcast %119 : f32 to vector<2x2x2x2xf32>
    %121 = arith.mulf %118, %120 : vector<2x2x2x2xf32>
    %122 = arith.addf %112, %121 : vector<2x2x2x2xf32>
    %c31 = arith.constant 31 : index
    %123 = memref.load %arg1[%c31] : memref<54xf32, #tpu.memory_space<smem>>
    %124 = vector.broadcast %123 : f32 to vector<2x2x2x2xf32>
    %125 = arith.mulf %118, %124 : vector<2x2x2x2xf32>
    %126 = arith.addf %116, %125 : vector<2x2x2x2xf32>
    %127 = vector.extract_strided_slice %117 {offsets = [0, 1, 0, 0], sizes = [2, 2, 2, 2], strides = [1, 1, 1, 1]} : vector<2x4x2x2xf32> to vector<2x2x2x2xf32>
    %c13 = arith.constant 13 : index
    %128 = memref.load %arg1[%c13] : memref<54xf32, #tpu.memory_space<smem>>
    %129 = vector.broadcast %128 : f32 to vector<2x2x2x2xf32>
    %130 = arith.mulf %127, %129 : vector<2x2x2x2xf32>
    %131 = arith.addf %122, %130 : vector<2x2x2x2xf32>
    %c40 = arith.constant 40 : index
    %132 = memref.load %arg1[%c40] : memref<54xf32, #tpu.memory_space<smem>>
    %133 = vector.broadcast %132 : f32 to vector<2x2x2x2xf32>
    %134 = arith.mulf %127, %133 : vector<2x2x2x2xf32>
    %135 = arith.addf %126, %134 : vector<2x2x2x2xf32>
    %136 = vector.extract_strided_slice %117 {offsets = [0, 2, 0, 0], sizes = [2, 2, 2, 2], strides = [1, 1, 1, 1]} : vector<2x4x2x2xf32> to vector<2x2x2x2xf32>
    %c22 = arith.constant 22 : index
    %137 = memref.load %arg1[%c22] : memref<54xf32, #tpu.memory_space<smem>>
    %138 = vector.broadcast %137 : f32 to vector<2x2x2x2xf32>
    %139 = arith.mulf %136, %138 : vector<2x2x2x2xf32>
    %140 = arith.addf %131, %139 : vector<2x2x2x2xf32>
    %c49 = arith.constant 49 : index
    %141 = memref.load %arg1[%c49] : memref<54xf32, #tpu.memory_space<smem>>
    %142 = vector.broadcast %141 : f32 to vector<2x2x2x2xf32>
    %143 = arith.mulf %136, %142 : vector<2x2x2x2xf32>
    %144 = arith.addf %135, %143 : vector<2x2x2x2xf32>
    %145 = vector.extract_strided_slice %0 {offsets = [0, 0, 1, 2], sizes = [2, 4, 2, 2], strides = [1, 1, 1, 1]} : vector<2x4x4x4xf32> to vector<2x4x2x2xf32>
    %146 = vector.extract_strided_slice %145 {offsets = [0, 0, 0, 0], sizes = [2, 2, 2, 2], strides = [1, 1, 1, 1]} : vector<2x4x2x2xf32> to vector<2x2x2x2xf32>
    %c5 = arith.constant 5 : index
    %147 = memref.load %arg1[%c5] : memref<54xf32, #tpu.memory_space<smem>>
    %148 = vector.broadcast %147 : f32 to vector<2x2x2x2xf32>
    %149 = arith.mulf %146, %148 : vector<2x2x2x2xf32>
    %150 = arith.addf %140, %149 : vector<2x2x2x2xf32>
    %c32 = arith.constant 32 : index
    %151 = memref.load %arg1[%c32] : memref<54xf32, #tpu.memory_space<smem>>
    %152 = vector.broadcast %151 : f32 to vector<2x2x2x2xf32>
    %153 = arith.mulf %146, %152 : vector<2x2x2x2xf32>
    %154 = arith.addf %144, %153 : vector<2x2x2x2xf32>
    %155 = vector.extract_strided_slice %145 {offsets = [0, 1, 0, 0], sizes = [2, 2, 2, 2], strides = [1, 1, 1, 1]} : vector<2x4x2x2xf32> to vector<2x2x2x2xf32>
    %c14 = arith.constant 14 : index
    %156 = memref.load %arg1[%c14] : memref<54xf32, #tpu.memory_space<smem>>
    %157 = vector.broadcast %156 : f32 to vector<2x2x2x2xf32>
    %158 = arith.mulf %155, %157 : vector<2x2x2x2xf32>
    %159 = arith.addf %150, %158 : vector<2x2x2x2xf32>
    %c41 = arith.constant 41 : index
    %160 = memref.load %arg1[%c41] : memref<54xf32, #tpu.memory_space<smem>>
    %161 = vector.broadcast %160 : f32 to vector<2x2x2x2xf32>
    %162 = arith.mulf %155, %161 : vector<2x2x2x2xf32>
    %163 = arith.addf %154, %162 : vector<2x2x2x2xf32>
    %164 = vector.extract_strided_slice %145 {offsets = [0, 2, 0, 0], sizes = [2, 2, 2, 2], strides = [1, 1, 1, 1]} : vector<2x4x2x2xf32> to vector<2x2x2x2xf32>
    %c23 = arith.constant 23 : index
    %165 = memref.load %arg1[%c23] : memref<54xf32, #tpu.memory_space<smem>>
    %166 = vector.broadcast %165 : f32 to vector<2x2x2x2xf32>
    %167 = arith.mulf %164, %166 : vector<2x2x2x2xf32>
    %168 = arith.addf %159, %167 : vector<2x2x2x2xf32>
    %c50 = arith.constant 50 : index
    %169 = memref.load %arg1[%c50] : memref<54xf32, #tpu.memory_space<smem>>
    %170 = vector.broadcast %169 : f32 to vector<2x2x2x2xf32>
    %171 = arith.mulf %164, %170 : vector<2x2x2x2xf32>
    %172 = arith.addf %163, %171 : vector<2x2x2x2xf32>
    %173 = vector.extract_strided_slice %0 {offsets = [0, 0, 2, 0], sizes = [2, 4, 2, 2], strides = [1, 1, 1, 1]} : vector<2x4x4x4xf32> to vector<2x4x2x2xf32>
    %174 = vector.extract_strided_slice %173 {offsets = [0, 0, 0, 0], sizes = [2, 2, 2, 2], strides = [1, 1, 1, 1]} : vector<2x4x2x2xf32> to vector<2x2x2x2xf32>
    %c6 = arith.constant 6 : index
    %175 = memref.load %arg1[%c6] : memref<54xf32, #tpu.memory_space<smem>>
    %176 = vector.broadcast %175 : f32 to vector<2x2x2x2xf32>
    %177 = arith.mulf %174, %176 : vector<2x2x2x2xf32>
    %178 = arith.addf %168, %177 : vector<2x2x2x2xf32>
    %c33 = arith.constant 33 : index
    %179 = memref.load %arg1[%c33] : memref<54xf32, #tpu.memory_space<smem>>
    %180 = vector.broadcast %179 : f32 to vector<2x2x2x2xf32>
    %181 = arith.mulf %174, %180 : vector<2x2x2x2xf32>
    %182 = arith.addf %172, %181 : vector<2x2x2x2xf32>
    %183 = vector.extract_strided_slice %173 {offsets = [0, 1, 0, 0], sizes = [2, 2, 2, 2], strides = [1, 1, 1, 1]} : vector<2x4x2x2xf32> to vector<2x2x2x2xf32>
    %c15 = arith.constant 15 : index
    %184 = memref.load %arg1[%c15] : memref<54xf32, #tpu.memory_space<smem>>
    %185 = vector.broadcast %184 : f32 to vector<2x2x2x2xf32>
    %186 = arith.mulf %183, %185 : vector<2x2x2x2xf32>
    %187 = arith.addf %178, %186 : vector<2x2x2x2xf32>
    %c42 = arith.constant 42 : index
    %188 = memref.load %arg1[%c42] : memref<54xf32, #tpu.memory_space<smem>>
    %189 = vector.broadcast %188 : f32 to vector<2x2x2x2xf32>
    %190 = arith.mulf %183, %189 : vector<2x2x2x2xf32>
    %191 = arith.addf %182, %190 : vector<2x2x2x2xf32>
    %192 = vector.extract_strided_slice %173 {offsets = [0, 2, 0, 0], sizes = [2, 2, 2, 2], strides = [1, 1, 1, 1]} : vector<2x4x2x2xf32> to vector<2x2x2x2xf32>
    %c24 = arith.constant 24 : index
    %193 = memref.load %arg1[%c24] : memref<54xf32, #tpu.memory_space<smem>>
    %194 = vector.broadcast %193 : f32 to vector<2x2x2x2xf32>
    %195 = arith.mulf %192, %194 : vector<2x2x2x2xf32>
    %196 = arith.addf %187, %195 : vector<2x2x2x2xf32>
    %c51 = arith.constant 51 : index
    %197 = memref.load %arg1[%c51] : memref<54xf32, #tpu.memory_space<smem>>
    %198 = vector.broadcast %197 : f32 to vector<2x2x2x2xf32>
    %199 = arith.mulf %192, %198 : vector<2x2x2x2xf32>
    %200 = arith.addf %191, %199 : vector<2x2x2x2xf32>
    %201 = vector.extract_strided_slice %0 {offsets = [0, 0, 2, 1], sizes = [2, 4, 2, 2], strides = [1, 1, 1, 1]} : vector<2x4x4x4xf32> to vector<2x4x2x2xf32>
    %202 = vector.extract_strided_slice %201 {offsets = [0, 0, 0, 0], sizes = [2, 2, 2, 2], strides = [1, 1, 1, 1]} : vector<2x4x2x2xf32> to vector<2x2x2x2xf32>
    %c7 = arith.constant 7 : index
    %203 = memref.load %arg1[%c7] : memref<54xf32, #tpu.memory_space<smem>>
    %204 = vector.broadcast %203 : f32 to vector<2x2x2x2xf32>
    %205 = arith.mulf %202, %204 : vector<2x2x2x2xf32>
    %206 = arith.addf %196, %205 : vector<2x2x2x2xf32>
    %c34 = arith.constant 34 : index
    %207 = memref.load %arg1[%c34] : memref<54xf32, #tpu.memory_space<smem>>
    %208 = vector.broadcast %207 : f32 to vector<2x2x2x2xf32>
    %209 = arith.mulf %202, %208 : vector<2x2x2x2xf32>
    %210 = arith.addf %200, %209 : vector<2x2x2x2xf32>
    %211 = vector.extract_strided_slice %201 {offsets = [0, 1, 0, 0], sizes = [2, 2, 2, 2], strides = [1, 1, 1, 1]} : vector<2x4x2x2xf32> to vector<2x2x2x2xf32>
    %c16 = arith.constant 16 : index
    %212 = memref.load %arg1[%c16] : memref<54xf32, #tpu.memory_space<smem>>
    %213 = vector.broadcast %212 : f32 to vector<2x2x2x2xf32>
    %214 = arith.mulf %211, %213 : vector<2x2x2x2xf32>
    %215 = arith.addf %206, %214 : vector<2x2x2x2xf32>
    %c43 = arith.constant 43 : index
    %216 = memref.load %arg1[%c43] : memref<54xf32, #tpu.memory_space<smem>>
    %217 = vector.broadcast %216 : f32 to vector<2x2x2x2xf32>
    %218 = arith.mulf %211, %217 : vector<2x2x2x2xf32>
    %219 = arith.addf %210, %218 : vector<2x2x2x2xf32>
    %220 = vector.extract_strided_slice %201 {offsets = [0, 2, 0, 0], sizes = [2, 2, 2, 2], strides = [1, 1, 1, 1]} : vector<2x4x2x2xf32> to vector<2x2x2x2xf32>
    %c25 = arith.constant 25 : index
    %221 = memref.load %arg1[%c25] : memref<54xf32, #tpu.memory_space<smem>>
    %222 = vector.broadcast %221 : f32 to vector<2x2x2x2xf32>
    %223 = arith.mulf %220, %222 : vector<2x2x2x2xf32>
    %224 = arith.addf %215, %223 : vector<2x2x2x2xf32>
    %c52 = arith.constant 52 : index
    %225 = memref.load %arg1[%c52] : memref<54xf32, #tpu.memory_space<smem>>
    %226 = vector.broadcast %225 : f32 to vector<2x2x2x2xf32>
    %227 = arith.mulf %220, %226 : vector<2x2x2x2xf32>
    %228 = arith.addf %219, %227 : vector<2x2x2x2xf32>
    %229 = vector.extract_strided_slice %0 {offsets = [0, 0, 2, 2], sizes = [2, 4, 2, 2], strides = [1, 1, 1, 1]} : vector<2x4x4x4xf32> to vector<2x4x2x2xf32>
    %230 = vector.extract_strided_slice %229 {offsets = [0, 0, 0, 0], sizes = [2, 2, 2, 2], strides = [1, 1, 1, 1]} : vector<2x4x2x2xf32> to vector<2x2x2x2xf32>
    %c8 = arith.constant 8 : index
    %231 = memref.load %arg1[%c8] : memref<54xf32, #tpu.memory_space<smem>>
    %232 = vector.broadcast %231 : f32 to vector<2x2x2x2xf32>
    %233 = arith.mulf %230, %232 : vector<2x2x2x2xf32>
    %234 = arith.addf %224, %233 : vector<2x2x2x2xf32>
    %c35 = arith.constant 35 : index
    %235 = memref.load %arg1[%c35] : memref<54xf32, #tpu.memory_space<smem>>
    %236 = vector.broadcast %235 : f32 to vector<2x2x2x2xf32>
    %237 = arith.mulf %230, %236 : vector<2x2x2x2xf32>
    %238 = arith.addf %228, %237 : vector<2x2x2x2xf32>
    %239 = vector.extract_strided_slice %229 {offsets = [0, 1, 0, 0], sizes = [2, 2, 2, 2], strides = [1, 1, 1, 1]} : vector<2x4x2x2xf32> to vector<2x2x2x2xf32>
    %c17 = arith.constant 17 : index
    %240 = memref.load %arg1[%c17] : memref<54xf32, #tpu.memory_space<smem>>
    %241 = vector.broadcast %240 : f32 to vector<2x2x2x2xf32>
    %242 = arith.mulf %239, %241 : vector<2x2x2x2xf32>
    %243 = arith.addf %234, %242 : vector<2x2x2x2xf32>
    %c44 = arith.constant 44 : index
    %244 = memref.load %arg1[%c44] : memref<54xf32, #tpu.memory_space<smem>>
    %245 = vector.broadcast %244 : f32 to vector<2x2x2x2xf32>
    %246 = arith.mulf %239, %245 : vector<2x2x2x2xf32>
    %247 = arith.addf %238, %246 : vector<2x2x2x2xf32>
    %248 = vector.extract_strided_slice %229 {offsets = [0, 2, 0, 0], sizes = [2, 2, 2, 2], strides = [1, 1, 1, 1]} : vector<2x4x2x2xf32> to vector<2x2x2x2xf32>
    %c26 = arith.constant 26 : index
    %249 = memref.load %arg1[%c26] : memref<54xf32, #tpu.memory_space<smem>>
    %250 = vector.broadcast %249 : f32 to vector<2x2x2x2xf32>
    %251 = arith.mulf %248, %250 : vector<2x2x2x2xf32>
    %252 = arith.addf %243, %251 : vector<2x2x2x2xf32>
    %c53 = arith.constant 53 : index
    %253 = memref.load %arg1[%c53] : memref<54xf32, #tpu.memory_space<smem>>
    %254 = vector.broadcast %253 : f32 to vector<2x2x2x2xf32>
    %255 = arith.mulf %248, %254 : vector<2x2x2x2xf32>
    %256 = arith.addf %247, %255 : vector<2x2x2x2xf32>
    %257 = math.tanh %252 : vector<2x2x2x2xf32>
    %c0_6 = arith.constant 0 : index
    %c0_7 = arith.constant 0 : index
    %c0_8 = arith.constant 0 : index
    %c0_9 = arith.constant 0 : index
    %c0_10 = arith.constant 0 : index
    %258 = vector.load %arg3[%c0_6, %c0_7, %c0_8, %c0_9, %c0_10] : memref<2x2x2x2x2xf32, #tpu.memory_space<vmem>>, vector<2x1x2x2x2xf32>
    %259 = vector.shape_cast %258 : vector<2x1x2x2x2xf32> to vector<2x2x2x2xf32>
    %260 = vector.shape_cast %257 : vector<2x2x2x2xf32> to vector<2x1x2x2x2xf32>
    tpu.vector_store %arg3[%c0_6, %c0_7, %c0_8, %c0_9, %c0_10], %260 {strides = array<i32>} : memref<2x2x2x2x2xf32, #tpu.memory_space<vmem>>, vector<2x1x2x2x2xf32>,
    %261 = math.tanh %256 : vector<2x2x2x2xf32>
    %c0_11 = arith.constant 0 : index
    %c1_12 = arith.constant 1 : index
    %c0_13 = arith.constant 0 : index
    %c0_14 = arith.constant 0 : index
    %c0_15 = arith.constant 0 : index
    %262 = vector.load %arg3[%c0_11, %c1_12, %c0_13, %c0_14, %c0_15] : memref<2x2x2x2x2xf32, #tpu.memory_space<vmem>>, vector<2x1x2x2x2xf32>
    %263 = vector.shape_cast %262 : vector<2x1x2x2x2xf32> to vector<2x2x2x2xf32>
    %264 = vector.shape_cast %261 : vector<2x2x2x2xf32> to vector<2x1x2x2x2xf32>
    tpu.vector_store %arg3[%c0_11, %c1_12, %c0_13, %c0_14, %c0_15], %264 {strides = array<i32>} : memref<2x2x2x2x2xf32, #tpu.memory_space<vmem>>, vector<2x1x2x2x2xf32>,
    return
  }
}

</mosaic_0001>

<bundles_post_ra>
// kernel: conv3d_tanh_pallas.1
= control target key start
LH: loop header
LB: loop body
LE: loop exit
PB: predicated region body
PF: predicated region fallthrough
CT: control target
= control target key end

     0   :  { %8 = vsyncpa [#allocation3], 0  ;;  %s2338_s0 = inlined_call_operand.vmem [shape: f32[2,4,4,4], index: 0, kind: input, shape index: {}]   ;;  %s2339_s1 = inlined_call_operand.vmem [shape: f32[54], index: 1, kind: input, shape index: {}]   ;;  %s2340_s2 = inlined_call_operand.vmem [shape: f32[2], index: 2, kind: input, shape index: {}]   ;;  %s2341_s3 = inlined_call_operand.vmem [shape: f32[2,2,2,2,2], index: 3, kind: output, shape index: {}]  }
   0x1   :  { %s17_s14 = sshll.u32 %s2339_s1, 4  ;;  %s18_s14 = int_to_ptr.vmem [resolvable:$true] %s17_s14 }
   0x2   :  { %9 = vsyncpa [#allocation5], 0  ;;  %s26_s17 = sshll.u32 %s2340_s2, 4  ;;  %s1545_s18 = smov [#allocation2]   ;;  %s27_s17 = int_to_ptr.vmem [resolvable:$true] %s26_s17 }
   0x3   :  { %20 = dma.vmem_to_smem %s18_s14, 16, %s1545_s18, [#allocation3]  }
   0x4   :  { %s1546_s19 = smov [#allocation4]  }
   0x5   :  { %29 = dma.vmem_to_smem %s27_s17, 16, %s1546_s19, [#allocation5]  }
   0x6   :  { %1541 = dma.done.wait [#allocation3], 16  }
   0x7   :  { %1542 = vsyncadd [#allocation3], 4294967280 }
   0x8   :  { %1543 = dma.done.wait [#allocation5], 16  }
   0x9   :  { %1544 = vsyncadd [#allocation5], 4294967280 }
   0xa   :  { %38 = sfence }
   0xb   :  { %s1437_s20 = sld [smem:[#allocation2 + $0x1]]  ;;  %v1578_v0 = vld [vmem:[%s2338_s0 + $0x10] sm:$0xf]  ;;  %v1583_v1 = vld [vmem:[%s2338_s0] sm:$0xf]  ;;  %s1547_s2 = smov 127  }
   0xc   :  { %s1438_s21 = sld [smem:[#allocation2 + $0x1c]]  ;;  %v1593_v7 = vld [vmem:[%s2338_s0 + $0x14] sm:$0xf]  ;;  %v1598_v8 = vld [vmem:[%s2338_s0 + $0x4] sm:$0xf]  ;;  %s1548_s16 = smov 126  }
   0xd   :  { %s1439_s29 = sld [smem:[#allocation2 + $0xa]]  ;;  %v1615_v16 = vld [vmem:[%s2338_s0 + $0x8] sm:$0xf]  ;;  %v1621_v17 = vld [vmem:[%s2338_s0 + $0x18] sm:$0xf]  ;;  %vm1411_vm0 = vcmask 9216  }
   0xe   :  { %s1440_s5 = sld [smem:[#allocation2 + $0x25]]  ;;  %v1638_v26 = vld [vmem:[%s2338_s0 + $0xc] sm:$0xf]  ;;  %v1648_v30 = vld [vmem:[%s2338_s0 + $0x1c] sm:$0xf] }
   0xf   :  { %s1441_s8 = sld [smem:[#allocation2 + $0x13]] }
  0x10   :  { %s1442_s11 = sld [smem:[#allocation2 + $0x2e]] }
  0x11   :  { %v112_v2 = vstv %s1437_s20  ;;  %s1443_s14 = sld [smem:[#allocation2 + $0x2]] }
  0x12   :  { %v115_v3 = vmul.f32 %v112_v2, %v1578_v0  ;;  %v113_v4 = vmul.f32 %v112_v2, %v1583_v1  ;;  %v138_v5 = vstv %s1438_s21  ;;  %v116_v9 = vmul.f32 %v112_v2, %v1593_v7  ;;  %s1444_s15 = sld [smem:[#allocation2 + $0x1d]] }
  0x13   :  { %v139_v6 = vmul.f32 %v138_v5, %v1583_v1  ;;  %v114_v10 = vmul.f32 %v112_v2, %v1598_v8  ;;  %v140_v11 = vmul.f32 %v138_v5, %v1598_v8  ;;  %v142_v12 = vmul.f32 %v138_v5, %v1593_v7  ;;  %s1445_s17 = sld [smem:[#allocation2 + $0xb]] }
  0x14   :  { %125 = vrot.lane.b32.xlu1 %v115_v3, %s1547_s2  ;;  %121 = vrot.lane.b32.xlu0 %v113_v4, %s1547_s2  ;;  %v141_v13 = vmul.f32 %v138_v5, %v1578_v0  ;;  %v164_v14 = vstv %s1439_s29  ;;  %v190_v21 = vstv %s1440_s5  ;;  %s1446_s18 = sld [smem:[#allocation2 + $0x26]] }
  0x15   :  { %147 = vrot.lane.b32.xlu2 %v139_v6, %s1547_s2  ;;  %v165_v15 = vmul.f32 %v164_v14, %v1598_v8  ;;  %v167_v18 = vmul.f32 %v164_v14, %v1593_v7  ;;  %v166_v19 = vmul.f32 %v164_v14, %v1615_v16  ;;  %v168_v20 = vmul.f32 %v164_v14, %v1621_v17  ;;  %s51_s19 = sld [smem:[#allocation2]] }
  0x16   :  { %v192_v22 = vmul.f32 %v190_v21, %v1615_v16  ;;  %v191_v23 = vmul.f32 %v190_v21, %v1598_v8  ;;  %v193_v24 = vmul.f32 %v190_v21, %v1593_v7  ;;  %v216_v25 = vstv %s1441_s8  ;;  %s1447_s20 = sld [smem:[#allocation2 + $0x14]] }
  0x17   :  { %v217_v27 = vmul.f32 %v216_v25, %v1615_v16  ;;  %v194_v28 = vmul.f32 %v190_v21, %v1621_v17  ;;  %v218_v29 = vmul.f32 %v216_v25, %v1638_v26  ;;  %v220_v31 = vmul.f32 %v216_v25, %v1648_v30  ;;  %s47_s21 = sld [smem:[#allocation4]] }
  0x18   :  { %v219_v32 = vmul.f32 %v216_v25, %v1621_v17  ;;  %v242_v33 = vstv %s1442_s11  ;;  %v268_v38 = vstv %s1443_s14  ;;  %v294_v42 = vstv %s1444_s15  ;;  %s1433_s22 = sld [smem:[#allocation2 + $0x9]] }
  0x19   :  { %v243_v34 = vmul.f32 %v242_v33, %v1615_v16  ;;  %v245_v35 = vmul.f32 %v242_v33, %v1621_v17  ;;  %v244_v36 = vmul.f32 %v242_v33, %v1638_v26  ;;  %v246_v37 = vmul.f32 %v242_v33, %v1648_v30  ;;  %s1435_s1 = sld [smem:[#allocation2 + $0x12]] }
  0x1a   :  { %v270_v39 = vmul.f32 %v268_v38, %v1598_v8  ;;  %v269_v40 = vmul.f32 %v268_v38, %v1583_v1  ;;  %v271_v41 = vmul.f32 %v268_v38, %v1578_v0  ;;  %v295_v43 = vmul.f32 %v294_v42, %v1583_v1  ;;  %s1448_s23 = sld [smem:[#allocation2 + $0x2f]] }
  0x1b   :  { %v272_v44 = vmul.f32 %v268_v38, %v1593_v7  ;;  %v296_v45 = vmul.f32 %v294_v42, %v1598_v8  ;;  %v298_v46 = vmul.f32 %v294_v42, %v1593_v7  ;;  %v297_v47 = vmul.f32 %v294_v42, %v1578_v0  ;;  %s1432_s24 = sld [smem:[#allocation2 + $0x1b]] }
  0x1c   :  { %127 = vrot.lane.b32.xlu1 %v116_v9, %s1547_s2  ;;  %123 = vrot.lane.b32.xlu0 %v114_v10, %s1547_s2  ;;  %v320_v48 = vstv %s1445_s17  ;;  %v346_v53 = vstv %s1446_s18  ;;  %s1431_s25 = sld [smem:[#allocation4 + $0x1]] }
  0x1d   :  { %149 = vrot.lane.b32.xlu2 %v140_v11, %s1547_s2  ;;  %v321_v49 = vmul.f32 %v320_v48, %v1598_v8  ;;  %v323_v50 = vmul.f32 %v320_v48, %v1593_v7  ;;  %v322_v51 = vmul.f32 %v320_v48, %v1615_v16  ;;  %v324_v52 = vmul.f32 %v320_v48, %v1621_v17  ;;  %s1455_s26 = sld [smem:[#allocation2 + $0x4]] }
  0x1e   :  { %v348_v54 = vmul.f32 %v346_v53, %v1615_v16  ;;  %v347_v55 = vmul.f32 %v346_v53, %v1598_v8  ;;  %v349_v57 = vmul.f32 %v346_v53, %v1593_v7  ;;  %v52_v58 = vstv %s51_s19  ;;  %s1434_s27 = sld [smem:[#allocation2 + $0x24]] }
  0x1f   :  { %v372_v59 = vstv %s1447_s20  ;;  %v53_v60 = vmul.f32 %v52_v58, %v1583_v1  ;;  %v350_v62 = vmul.f32 %v346_v53, %v1621_v17  ;;  %v1700_v2 = vstv %s47_s21  ;;  %s1436_s28 = sld [smem:[#allocation2 + $0x2d]] }
  0x20   :  { %v373_v61 = vmul.f32 %v372_v59, %v1615_v16  ;;  %v1702_v3 = vstv %s1433_s22  ;;  %v374_v4 = vmul.f32 %v372_v59, %v1638_v26  ;;  %v1710_v9 = vstv %s1435_s1  ;;  %s1456_s29 = sld [smem:[#allocation2 + $0x1f]] }
  0x21   :  { %v73_v5 = vmul.f32 %v1702_v3, %v1598_v8  ;;  %v57_v6 = vadd.f32 %v53_v60, %v1700_v2  ;;  %v93_v10 = vmul.f32 %v1710_v9, %v1615_v16  ;;  %v375_v14 = vmul.f32 %v372_v59, %v1621_v17  ;;  %s1457_s30 = sld [smem:[#allocation2 + $0xd]] }
  0x22   :  { %s1458_s4 = sld [smem:[#allocation2 + $0x28]] }
  0x23   :  { %v77_v11 = vadd.f32 %v73_v5, %v57_v6  ;;  %s1459_s5 = sld [smem:[#allocation2 + $0x16]] }
  0x24   :  { %153 = vrot.lane.b32.xlu1 %v142_v12, %s1547_s2  ;;  %151 = vrot.lane.b32.xlu0 %v141_v13, %s1547_s2  ;;  %v56_v12 = vmul.f32 %v52_v58, %v1593_v7  ;;  %v376_v13 = vmul.f32 %v372_v59, %v1648_v30  ;;  %v1739_v38 = vstv %s1434_s27  ;;  %s1460_s6 = sld [smem:[#allocation2 + $0x31]] }
  0x25   :  { %173 = vrot.lane.b32.xlu2 %v165_v15, %s1547_s2  ;;  %v85_v42 = vmul.f32 %v1739_v38, %v1593_v7  ;;  %s1461_s7 = sld [smem:[#allocation2 + $0x5]] }
  0x26   :  { %v60_v21 = vadd.f32 %v56_v12, %v1700_v2  ;;  %s1462_s8 = sld [smem:[#allocation2 + $0x20]] }
  0x27   :  { %s1463_s9 = sld [smem:[#allocation2 + $0xe]] }
  0x28   :  { %s1464_s10 = sld [smem:[#allocation2 + $0x29]] }
  0x29   :  { %s1449_s11 = sld [smem:[#allocation2 + $0x3]] }
  0x2a   :  { %s1451_s12 = sld [smem:[#allocation2 + $0xc]] }
  0x2b   :  { %s1453_s13 = sld [smem:[#allocation2 + $0x15]] }
  0x2c   :  { %177 = vrot.lane.b32.xlu1 %v167_v18, %s1547_s2  ;;  %175 = vrot.lane.b32.xlu0 %v166_v19, %s1547_s2  ;;  %v398_v18 = vstv %s1448_s23  ;;  %s1465_s14 = sld [smem:[#allocation2 + $0x17]] }
  0x2d   :  { %179 = vrot.lane.b32.xlu2 %v168_v20, %s1547_s2  ;;  %v399_v19 = vmul.f32 %v398_v18, %v1615_v16  ;;  %v97_v20 = vadd.f32 %v93_v10, %v77_v11  ;;  %v400_v33 = vmul.f32 %v398_v18, %v1638_v26  ;;  %s1900_s15 = sld [smem:[#allocation2 + $0x1e]] }
  0x2e   :  { %s1914_s17 = sld [smem:[#allocation2 + $0x27]] }
  0x2f   :  { %s1917_s18 = sld [smem:[#allocation2 + $0x30]] }
  0x30   :  { %s1936_s19 = sld [smem:[#allocation2 + $0x32]] }
  0x31   :  { %s1985_s20 = sld [smem:[#allocation2 + $0x7]] }
  0x32   :  { %s2018_s1 = sld [smem:[#allocation2 + $0x22]] }
  0x33   :  { %s2177_s21 = sld [smem:[#allocation2 + $0x21]] }
  0x34   :  { %201 = vrot.lane.b32.xlu1 %v192_v22, %s1547_s2  ;;  %199 = vrot.lane.b32.xlu0 %v191_v23, %s1547_s2  ;;  %v76_v22 = vmul.f32 %v1702_v3, %v1621_v17  ;;  %v1724_v23 = vstv %s1432_s24  ;;  %s2191_s22 = sld [smem:[#allocation2 + $0x2a]] }
  0x35   :  { %203 = vrot.lane.b32.xlu2 %v193_v24, %s1547_s2  ;;  %v63_v6 = vmul.f32 %v1724_v23, %v1583_v1  ;;  %v64_v11 = vmul.f32 %v1724_v23, %v1598_v8  ;;  %s2213_s23 = sld [smem:[#allocation2 + $0x35]] }
  0x3c   :  { %225 = vrot.lane.b32.xlu1 %v217_v27, %s1547_s2  ;;  %205 = vrot.lane.b32.xlu0 %v194_v28, %s1547_s2  ;;  %v80_v28 = vadd.f32 %v76_v22, %v60_v21  ;;  %v83_v21 = vmul.f32 %v1739_v38, %v1598_v8 }
  0x3d   :  { %227 = vrot.lane.b32.xlu2 %v218_v29, %s1547_s2  ;;  %v96_v29 = vmul.f32 %v1710_v9, %v1648_v30 }
  0x44   :  { %231 = vrot.lane.b32.xlu1 %v220_v31, %s1547_s2  ;;  %229 = vrot.lane.b32.xlu0 %v219_v32, %s1547_s2  ;;  %v65_v31 = vmul.f32 %v1724_v23, %v1578_v0  ;;  %v401_v32 = vmul.f32 %v398_v18, %v1621_v17 }
  0x45   :  { %251 = vrot.lane.b32.xlu2 %v243_v34, %s1547_s2 }
  0x4c   :  { %255 = vrot.lane.b32.xlu1 %v245_v35, %s1547_s2  ;;  %253 = vrot.lane.b32.xlu0 %v244_v36, %s1547_s2  ;;  %v556_v36 = vstv %s1455_s26 }
  0x4d   :  { %257 = vrot.lane.b32.xlu2 %v246_v37, %s1547_s2  ;;  %v1737_v37 = vstv %s1431_s25  ;;  %v560_v12 = vmul.f32 %v556_v36, %v1593_v7 }
  0x4e   :  { %v67_v22 = vadd.f32 %v63_v6, %v1737_v37 }
  0x54   :  { %279 = vrot.lane.b32.xlu1 %v270_v39, %s1548_s16  ;;  %277 = vrot.lane.b32.xlu0 %v269_v40, %s1548_s16  ;;  %v402_v39 = vmul.f32 %v398_v18, %v1648_v30  ;;  %v100_v40 = vadd.f32 %v96_v29, %v80_v28  ;;  %v84_v28 = vmul.f32 %v1739_v38, %v1615_v16  ;;  %v568_v29 = vrot.slane %v560_v12, 1 }
  0x55   :  { %281 = vrot.lane.b32.xlu2 %v271_v41, %s1548_s16  ;;  %v69_v41 = vadd.f32 %v65_v31, %v1737_v37 }
  0x5c   :  { %303 = vrot.lane.b32.xlu1 %v295_v43, %s1548_s16  ;;  %283 = vrot.lane.b32.xlu0 %v272_v44, %s1548_s16  ;;  %v55_v43 = vmul.f32 %v52_v58, %v1578_v0  ;;  %v558_v44 = vmul.f32 %v556_v36, %v1598_v8 }
  0x5d   :  { %305 = vrot.lane.b32.xlu2 %v296_v45, %s1548_s16  ;;  %v557_v45 = vmul.f32 %v556_v36, %v1583_v1 }
  0x64   :  { %309 = vrot.lane.b32.xlu1 %v298_v46, %s1548_s16  ;;  %307 = vrot.lane.b32.xlu0 %v297_v47, %s1548_s16  ;;  %v54_v46 = vmul.f32 %v52_v58, %v1598_v8  ;;  %v1751_v47 = vstv %s1436_s28  ;;  %v565_v58 = vrot.slane %v557_v45, 1 }
  0x65   :  { %329 = vrot.lane.b32.xlu2 %v321_v49, %s1548_s16  ;;  %v105_v53 = vmul.f32 %v1751_v47, %v1621_v17 }
  0x66   :  { %v58_v60 = vadd.f32 %v54_v46, %v1700_v2 }
  0x6c   :  { %333 = vrot.lane.b32.xlu1 %v323_v50, %s1548_s16  ;;  %331 = vrot.lane.b32.xlu0 %v322_v51, %s1548_s16  ;;  %v559_v50 = vmul.f32 %v556_v36, %v1578_v0 }
  0x6d   :  { %335 = vrot.lane.b32.xlu2 %v324_v52, %s1548_s16  ;;  %v89_v52 = vadd.f32 %v85_v42, %v69_v41  ;;  %v104_v41 = vmul.f32 %v1751_v47, %v1638_v26 }
  0x6e   :  { %v567_v5 = vrot.slane %v559_v50, 1  ;;  %v616_v50 = vstv %s1457_s30 }
  0x6f   :  { %v1689_v56 = vpop.permute.xlu2 %147  ;;  %v109_v10 = vadd.f32 %v105_v53, %v89_v52  ;;  %v617_v53 = vmul.f32 %v616_v50, %v1598_v8  ;;  %v618_v6 = vmul.f32 %v616_v50, %v1615_v16 }
  0x74   :  { %357 = vrot.lane.b32.xlu1 %v348_v54, %s1548_s16  ;;  %355 = vrot.lane.b32.xlu0 %v347_v55, %s1548_s16  ;;  %v75_v54 = vmul.f32 %v1702_v3, %v1593_v7  ;;  %v59_v55 = vadd.f32 %v55_v43, %v1700_v2 }
  0x75   :  { %359 = vrot.lane.b32.xlu2 %v349_v57, %s1548_s16  ;;  %v566_v57 = vrot.slane %v558_v44, 1 }
  0x77   :  { %v1698_v63 = vpop.permute.xlu2 %149 }
  0x7c   :  { %381 = vrot.lane.b32.xlu1 %v373_v61, %s1548_s16  ;;  %361 = vrot.lane.b32.xlu0 %v350_v62, %s1548_s16  ;;  %v74_v61 = vmul.f32 %v1702_v3, %v1615_v16  ;;  %v95_v3 = vmul.f32 %v1710_v9, %v1621_v17 }
  0x7d   :  { %383 = vrot.lane.b32.xlu2 %v374_v4, %s1548_s16  ;;  %v586_v4 = vstv %s1456_s29 }
  0x7e   :  { %v587_v2 = vmul.f32 %v586_v4, %v1583_v1  ;;  %v590_v43 = vmul.f32 %v586_v4, %v1593_v7  ;;  %v589_v44 = vmul.f32 %v586_v4, %v1578_v0 }
  0x7f   :  { %v174_v15 = vpop.permute.xlu2 %173 }
  0x84   :  { %387 = vrot.lane.b32.xlu1 %v376_v13, %s1548_s16  ;;  %385 = vrot.lane.b32.xlu0 %v375_v14, %s1548_s16  ;;  %v79_v13 = vadd.f32 %v75_v54, %v59_v55  ;;  %v78_v14 = vadd.f32 %v74_v61, %v58_v60 }
  0x85   :  { %407 = vrot.lane.b32.xlu2 %v399_v19, %s1548_s16 }
  0x86   :  { %v1726_v24 = vpop.permute.xlu1 %125  ;;  %v122_v25 = vpop.permute.xlu0 %121 }
  0x87   :  { %v133_v27 = vadd.f32 %v122_v25, %v97_v20  ;;  %v180_v34 = vpop.permute.xlu2 %179  ;;  %v588_v20 = vmul.f32 %v586_v4, %v1598_v8  ;;  %v625_v4 = vrot.slane %v617_v53, 1 }
  0x89   :  { %v1735_v35 = vadd.f32 %v174_v15, %v133_v27  ;;  %v94_v15 = vmul.f32 %v1710_v9, %v1638_v26  ;;  %v68_v27 = vadd.f32 %v64_v11, %v1737_v37  ;;  %v595_v9 = vrot.slane %v587_v2, 1 }
  0x8a   :  { %v596_v36 = vrot.slane %v588_v20, 1 }
  0x8b   :  { %v88_v42 = vadd.f32 %v84_v28, %v68_v27 }
  0x8c   :  { %411 = vrot.lane.b32.xlu1 %v401_v32, %s1548_s16  ;;  %409 = vrot.lane.b32.xlu0 %v400_v33, %s1548_s16  ;;  %v99_v32 = vadd.f32 %v95_v3, %v79_v13  ;;  %v98_v33 = vadd.f32 %v94_v15, %v78_v14  ;;  %v620_v3 = vmul.f32 %v616_v50, %v1621_v17 }
  0x8d   :  { %413 = vrot.lane.b32.xlu2 %v402_v39, %s1548_s16  ;;  %v103_v39 = vmul.f32 %v1751_v47, %v1615_v16  ;;  %v108_v61 = vadd.f32 %v104_v41, %v88_v42  ;;  %v676_v41 = vstv %s1459_s5  ;;  %s1476_s5 = sld [smem:[#allocation2 + $0x2b]] }
  0x8e   :  { %v128_v48 = vpop.permute.xlu1 %127  ;;  %v124_v49 = vpop.permute.xlu0 %123  ;;  %v135_v45 = vadd.f32 %v1726_v24, %v99_v32 }
  0x8f   :  { %v136_v51 = vadd.f32 %v128_v48, %v100_v40  ;;  %v204_v59 = vpop.permute.xlu2 %203  ;;  %v87_v40 = vadd.f32 %v83_v21, %v67_v22  ;;  %v134_v46 = vadd.f32 %v124_v49, %v98_v33  ;;  %v66_v48 = vmul.f32 %v1724_v23, %v1593_v7 }
  0x90   :  { %v86_v49 = vmul.f32 %v1739_v38, %v1621_v17  ;;  %v160_v11 = vadd.f32 %v1698_v63, %v108_v61  ;;  %v106_v38 = vmul.f32 %v1751_v47, %v1648_v30  ;;  %v628_v63 = vrot.slane %v620_v3, 1 }
  0x91   :  { %v1763_v62 = vadd.f32 %v180_v34, %v136_v51  ;;  %v70_v24 = vadd.f32 %v66_v48, %v1737_v37 }
  0x93   :  { %v90_v37 = vadd.f32 %v86_v49, %v70_v24 }
  0x94   :  { %571 = vrot.lane.b32.xlu1 %v566_v57, %s1547_s2  ;;  %569 = vrot.lane.b32.xlu0 %v565_v58, %s1547_s2  ;;  %v107_v57 = vadd.f32 %v103_v39, %v87_v40  ;;  %v598_v58 = vrot.slane %v590_v43, 1 }
  0x95   :  { %573 = vrot.lane.b32.xlu2 %v567_v5, %s1547_s2  ;;  %v619_v5 = vmul.f32 %v616_v50, %v1593_v7  ;;  %v110_v21 = vadd.f32 %v106_v38, %v90_v37 }
  0x96   :  { %v1777_v18 = vpop.permute.xlu1 %153  ;;  %v152_v19 = vpop.permute.xlu0 %151 }
  0x97   :  { %v161_v25 = vadd.f32 %v152_v19, %v109_v10  ;;  %v228_v31 = vpop.permute.xlu2 %227  ;;  %v159_v10 = vadd.f32 %v1689_v56, %v107_v57  ;;  %v627_v15 = vrot.slane %v619_v5, 1  ;;  %v626_v19 = vrot.slane %v618_v6, 1 }
  0x98   :  { %v646_v56 = vstv %s1458_s4  ;;  %v162_v27 = vadd.f32 %v1777_v18, %v110_v21  ;;  %v677_v18 = vmul.f32 %v676_v41, %v1615_v16  ;;  %v680_v57 = vmul.f32 %v676_v41, %v1648_v30  ;;  %s1475_s4 = sld [smem:[#allocation2 + $0x10]] }
  0x99   :  { %v1787_v34 = vadd.f32 %v204_v59, %v161_v25  ;;  %v597_v59 = vrot.slane %v589_v44, 1  ;;  %v648_v47 = vmul.f32 %v646_v56, %v1615_v16  ;;  %v647_v25 = vmul.f32 %v646_v56, %v1598_v8 }
  0x9a   :  { %v650_v43 = vmul.f32 %v646_v56, %v1621_v17  ;;  %v685_v50 = vrot.slane %v677_v18, 1  ;;  %v688_v49 = vrot.slane %v680_v57, 1 }
  0x9b   :  { %v656_v33 = vrot.slane %v648_v47, 1 }
  0x9c   :  { %599 = vrot.lane.b32.xlu1 %v595_v9, %s1547_s2  ;;  %575 = vrot.lane.b32.xlu0 %v568_v29, %s1547_s2  ;;  %v649_v29 = vmul.f32 %v646_v56, %v1593_v7 }
  0x9d   :  { %601 = vrot.lane.b32.xlu2 %v596_v36, %s1547_s2  ;;  %v655_v36 = vrot.slane %v647_v25, 1 }
  0x9e   :  { %v178_v51 = vpop.permute.xlu1 %177  ;;  %v176_v52 = vpop.permute.xlu0 %175  ;;  %v657_v42 = vrot.slane %v649_v29, 1 }
  0x9f   :  { %v187_v54 = vadd.f32 %v178_v51, %v135_v45  ;;  %v186_v55 = vadd.f32 %v176_v52, %v134_v46  ;;  %v252_v60 = vpop.permute.xlu2 %251  ;;  %v658_v51 = vrot.slane %v650_v43, 1 }
  0xa1   :  { %v1805_v23 = vadd.f32 %v228_v31, %v186_v55 }
  0xa4   :  { %605 = vrot.lane.b32.xlu1 %v598_v58, %s1547_s2  ;;  %603 = vrot.lane.b32.xlu0 %v597_v59, %s1547_s2  ;;  %v679_v58 = vmul.f32 %v676_v41, %v1621_v17  ;;  %v706_v59 = vstv %s1460_s6 }
  0xa5   :  { %629 = vrot.lane.b32.xlu2 %v625_v4, %s1547_s2  ;;  %v708_v37 = vmul.f32 %v706_v59, %v1638_v26 }
  0xa6   :  { %v202_v2 = vpop.permute.xlu1 %201  ;;  %v200_v12 = vpop.permute.xlu0 %199  ;;  %v687_v4 = vrot.slane %v679_v58, 1 }
  0xa7   :  { %v212_v13 = vadd.f32 %v202_v2, %v160_v11  ;;  %v211_v14 = vadd.f32 %v200_v12, %v159_v10  ;;  %v258_v20 = vpop.permute.xlu2 %257  ;;  %v709_v11 = vmul.f32 %v706_v59, %v1621_v17 }
  0xa9   :  { %v1817_v22 = vadd.f32 %v252_v60, %v211_v14  ;;  %v716_v14 = vrot.slane %v708_v37, 1 }
  0xac   :  { %633 = vrot.lane.b32.xlu1 %v627_v15, %s1547_s2  ;;  %631 = vrot.lane.b32.xlu0 %v626_v19, %s1547_s2 }
  0xad   :  { %635 = vrot.lane.b32.xlu2 %v628_v63, %s1547_s2 }
  0xae   :  { %v226_v28 = vpop.permute.xlu1 %225  ;;  %v206_v9 = vpop.permute.xlu0 %205 }
  0xaf   :  { %v237_v31 = vadd.f32 %v226_v28, %v1735_v35  ;;  %v214_v32 = vadd.f32 %v206_v9, %v162_v27  ;;  %v282_v39 = vpop.permute.xlu2 %281  ;;  %v678_v35 = vmul.f32 %v676_v41, %v1638_v26 }
  0xb1   :  { %v1827_v40 = vadd.f32 %v258_v20, %v214_v32  ;;  %v686_v55 = vrot.slane %v678_v35, 1  ;;  %v736_v20 = vstv %s1461_s7 }
  0xb2   :  { %v738_v56 = vmul.f32 %v736_v20, %v1598_v8  ;;  %v737_v63 = vmul.f32 %v736_v20, %v1583_v1  ;;  %v740_v41 = vmul.f32 %v736_v20, %v1593_v7 }
  0xb4   :  { %661 = vrot.lane.b32.xlu1 %v656_v33, %s1547_s2  ;;  %659 = vrot.lane.b32.xlu0 %v655_v36, %s1547_s2  ;;  %v746_v9 = vrot.slane %v738_v56, 1  ;;  %v745_v29 = vrot.slane %v737_v63, 1  ;;  %v766_v33 = vstv %s1462_s8  ;;  %v748_v35 = vrot.slane %v740_v41, 1  ;;  %s1477_s8 = sld [smem:[#allocation2 + $0x19]] }
  0xb5   :  { %663 = vrot.lane.b32.xlu2 %v657_v42, %s1547_s2  ;;  %v424_v63 = vstv %s1449_s11 }
  0xb6   :  { %v232_v44 = vpop.permute.xlu1 %231  ;;  %v230_v45 = vpop.permute.xlu0 %229 }
  0xb7   :  { %v240_v46 = vadd.f32 %v232_v44, %v1763_v62  ;;  %v239_v48 = vadd.f32 %v230_v45, %v187_v54  ;;  %v306_v52 = vpop.permute.xlu2 %305  ;;  %v707_v62 = vmul.f32 %v706_v59, %v1615_v16 }
  0xb9   :  { %v1836_v53 = vadd.f32 %v282_v39, %v239_v48  ;;  %v715_v10 = vrot.slane %v707_v62, 1  ;;  %v767_v39 = vmul.f32 %v766_v33, %v1583_v1 }
  0xbb   :  { %v775_v45 = vrot.slane %v767_v39, 1  ;;  %v426_v39 = vmul.f32 %v424_v63, %v1598_v8 }
  0xbc   :  { %689 = vrot.lane.b32.xlu1 %v685_v50, %s1547_s2  ;;  %665 = vrot.lane.b32.xlu0 %v658_v51, %s1547_s2  ;;  %v770_v51 = vmul.f32 %v766_v33, %v1593_v7 }
  0xbd   :  { %691 = vrot.lane.b32.xlu2 %v686_v55, %s1547_s2  ;;  %v796_v55 = vstv %s1463_s9  ;;  %s1478_s9 = sld [smem:[#allocation2 + $0x34]] }
  0xbe   :  { %v256_v60 = vpop.permute.xlu1 %255  ;;  %v254_v61 = vpop.permute.xlu0 %253 }
  0xbf   :  { %v265_v54 = vadd.f32 %v256_v60, %v1787_v34  ;;  %v264_v24 = vadd.f32 %v254_v61, %v212_v13  ;;  %v330_v5 = vpop.permute.xlu2 %329  ;;  %v710_v34 = vmul.f32 %v706_v59, %v1648_v30  ;;  %v717_v13 = vrot.slane %v709_v11, 1 }
  0xc0   :  { %v778_v61 = vrot.slane %v770_v51, 1  ;;  %v800_v11 = vmul.f32 %v796_v55, %v1621_v17 }
  0xc1   :  { %v1845_v6 = vadd.f32 %v306_v52, %v264_v24  ;;  %v718_v21 = vrot.slane %v710_v34, 1  ;;  %v769_v52 = vmul.f32 %v766_v33, %v1578_v0 }
  0xc3   :  { %v777_v62 = vrot.slane %v769_v52, 1 }
  0xc4   :  { %695 = vrot.lane.b32.xlu1 %v688_v49, %s1547_s2  ;;  %693 = vrot.lane.b32.xlu0 %v687_v4, %s1547_s2  ;;  %v799_v4 = vmul.f32 %v796_v55, %v1593_v7 }
  0xc5   :  { %719 = vrot.lane.b32.xlu2 %v715_v10, %s1547_s2 }
  0xc6   :  { %v280_v38 = vpop.permute.xlu1 %279  ;;  %v278_v2 = vpop.permute.xlu0 %277 }
  0xc7   :  { %v290_v12 = vadd.f32 %v280_v38, %v1805_v23  ;;  %v289_v3 = vadd.f32 %v278_v2, %v237_v31  ;;  %v336_v15 = vpop.permute.xlu2 %335  ;;  %v739_v23 = vmul.f32 %v736_v20, %v1578_v0  ;;  %v807_v2 = vrot.slane %v799_v4, 1 }
  0xc9   :  { %v1854_v19 = vadd.f32 %v330_v5, %v289_v3  ;;  %v747_v36 = vrot.slane %v739_v23, 1  ;;  %v798_v5 = vmul.f32 %v796_v55, %v1615_v16  ;;  %v1905_v23 = vstv %s1451_s12 }
  0xca   :  { %v1921_v41 = vmul.f32 %v1905_v23, %v1615_v16 }
  0xcb   :  { %v806_v34 = vrot.slane %v798_v5, 1 }
  0xcc   :  { %723 = vrot.lane.b32.xlu1 %v717_v13, %s1547_s2  ;;  %721 = vrot.lane.b32.xlu0 %v716_v14, %s1547_s2  ;;  %v826_v13 = vstv %s1464_s10  ;;  %v808_v14 = vrot.slane %v800_v11, 1 }
  0xcd   :  { %725 = vrot.lane.b32.xlu2 %v718_v21, %s1547_s2  ;;  %v829_v56 = vmul.f32 %v826_v13, %v1593_v7 }
  0xce   :  { %v304_v47 = vpop.permute.xlu1 %303  ;;  %v284_v25 = vpop.permute.xlu0 %283 }
  0xcf   :  { %v315_v27 = vadd.f32 %v304_v47, %v1817_v22  ;;  %v292_v28 = vadd.f32 %v284_v25, %v240_v46  ;;  %v360_v31 = vpop.permute.xlu2 %359  ;;  %v768_v22 = vmul.f32 %v766_v33, %v1598_v8  ;;  %v1912_v33 = vstv %s1453_s13 }
  0xd1   :  { %v1863_v32 = vadd.f32 %v336_v15, %v292_v28  ;;  %v776_v50 = vrot.slane %v768_v22, 1  ;;  %v828_v15 = vmul.f32 %v826_v13, %v1615_v16  ;;  %v830_v22 = vmul.f32 %v826_v13, %v1621_v17 }
  0xd4   :  { %751 = vrot.lane.b32.xlu1 %v746_v9, %s1548_s16  ;;  %749 = vrot.lane.b32.xlu0 %v745_v29, %s1548_s16 }
  0xd5   :  { %753 = vrot.lane.b32.xlu2 %v747_v36, %s1548_s16  ;;  %v856_v36 = vstv %s1465_s14  ;;  %s1480_s14 = sld [smem:[#allocation2 + $0x23]] }
  0xd6   :  { %v310_v42 = vpop.permute.xlu1 %309  ;;  %v308_v18 = vpop.permute.xlu0 %307 }
  0xd7   :  { %v318_v43 = vadd.f32 %v310_v42, %v1827_v40  ;;  %v317_v44 = vadd.f32 %v308_v18, %v265_v54  ;;  %v384_v46 = vpop.permute.xlu2 %383  ;;  %v797_v40 = vmul.f32 %v796_v55, %v1598_v8  ;;  %v471_v42 = vmul.f32 %v1905_v23, %v1593_v7 }
  0xd8   :  { %v857_v18 = vmul.f32 %v856_v36, %v1615_v16  ;;  %v478_v55 = vrot.slane %v1921_v41, 1 }
  0xd9   :  { %v1872_v48 = vadd.f32 %v360_v31, %v317_v44  ;;  %v805_v49 = vrot.slane %v797_v40, 1  ;;  %v427_v31 = vmul.f32 %v424_v63, %v1578_v0  ;;  %v425_v44 = vmul.f32 %v424_v63, %v1583_v1 }
  0xdc   :  { %779 = vrot.lane.b32.xlu1 %v775_v45, %s1548_s16  ;;  %755 = vrot.lane.b32.xlu0 %v748_v35, %s1548_s16  ;;  %v435_v45 = vrot.slane %v427_v31, 1  ;;  %v515_v35 = vmul.f32 %v1912_v33, %v1621_v17 }
  0xdd   :  { %781 = vrot.lane.b32.xlu2 %v776_v50, %s1548_s16  ;;  %v446_v50 = vstv %s1900_s15  ;;  %s1482_s15 = sld [smem:[#allocation2 + $0x2c]] }
  0xde   :  { %v334_v57 = vpop.permute.xlu1 %333  ;;  %v332_v58 = vpop.permute.xlu0 %331 }
  0xdf   :  { %v1881_v59 = vadd.f32 %v334_v57, %v1836_v53  ;;  %v342_v60 = vadd.f32 %v332_v58, %v290_v12  ;;  %v408_v54 = vpop.permute.xlu2 %407  ;;  %v858_v57 = vmul.f32 %v856_v36, %v1638_v26 }
  0xe1   :  { %v1883_v24 = vadd.f32 %v384_v46, %v342_v60  ;;  %v434_v46 = vrot.slane %v426_v39, 1  ;;  %v479_v60 = vrot.slane %v471_v42, 1 }
  0xe4   :  { %785 = vrot.lane.b32.xlu1 %v778_v61, %s1548_s16  ;;  %783 = vrot.lane.b32.xlu0 %v777_v62, %s1548_s16  ;;  %v469_v61 = vmul.f32 %v1905_v23, %v1598_v8  ;;  %v865_v62 = vrot.slane %v857_v18, 1 }
  0xe5   :  { %809 = vrot.lane.b32.xlu2 %v805_v49, %s1548_s16  ;;  %v448_v49 = vmul.f32 %v446_v50, %v1598_v8 }
  0xe6   :  { %v358_v10 = vpop.permute.xlu1 %357  ;;  %v356_v53 = vpop.permute.xlu0 %355 }
  0xe7   :  { %v1892_v37 = vadd.f32 %v358_v10, %v1845_v6  ;;  %v367_v38 = vadd.f32 %v356_v53, %v315_v27  ;;  %v414_v12 = vpop.permute.xlu2 %413  ;;  %v827_v6 = vmul.f32 %v826_v13, %v1598_v8  ;;  %v836_v27 = vrot.slane %v828_v15, 1 }
  0xe8   :  { %v447_v10 = vmul.f32 %v446_v50, %v1583_v1  ;;  %v433_v53 = vrot.slane %v425_v44, 1  ;;  %v477_v15 = vrot.slane %v469_v61, 1  ;;  %v442_v1 = vadd.f32 %v434_v46, %v1883_v24 }
  0xe9   :  { %v1894_v3 = vadd.f32 %v408_v54, %v367_v38  ;;  %v835_v28 = vrot.slane %v827_v6, 1  ;;  %v838_v54 = vrot.slane %v830_v22, 1  ;;  %v1954_v38 = vstv %s1914_s17  ;;  %s1467_s17 = sld [smem:[#allocation2 + $0x6]] }
  0xea   :  { %v456_v6 = vrot.slane %v448_v49, 1  ;;  %v486_v44 = vadd.f32 %v478_v55, %v442_v1 }
  0xec   :  { %813 = vrot.lane.b32.xlu1 %v807_v2, %s1548_s16  ;;  %811 = vrot.lane.b32.xlu0 %v806_v34, %s1548_s16  ;;  %v866_v2 = vrot.slane %v858_v57, 1  ;;  %v513_v34 = vmul.f32 %v1912_v33, %v1615_v16  ;;  %v449_v57 = vmul.f32 %v446_v50, %v1578_v0 }
  0xed   :  { %815 = vrot.lane.b32.xlu2 %v808_v14, %s1548_s16  ;;  %v492_v14 = vmul.f32 %v1954_v38, %v1615_v16 }
  0xee   :  { %v382_v20 = vpop.permute.xlu1 %381  ;;  %v362_v21 = vpop.permute.xlu0 %361  ;;  %v521_v24 = vrot.slane %v513_v34, 1 }
  0xef   :  { %v393_v47 = vadd.f32 %v382_v20, %v1854_v19  ;;  %v370_v25 = vadd.f32 %v362_v21, %v318_v43  ;;  %v1907_v9 = vpop.permute.xlu2 %573  ;;  %v837_v19 = vrot.slane %v829_v56, 1  ;;  %v1931_v43 = vmul.f32 %v1912_v33, %v1638_v26 }
  0xf0   :  { %v860_v20 = vmul.f32 %v856_v36, %v1648_v30  ;;  %v859_v21 = vmul.f32 %v856_v36, %v1621_v17  ;;  %v500_v18 = vrot.slane %v492_v14, 1  ;;  %v2011_v14 = vld [vmem:[%s2338_s0 + $0x14] sm:$0xf] }
  0xf1   :  { %v1909_v29 = vadd.f32 %v414_v12, %v370_v25  ;;  %v522_v5 = vrot.slane %v1931_v43, 1  ;;  %v428_v12 = vmul.f32 %v424_v63, %v1593_v7  ;;  %v441_v56 = vadd.f32 %v433_v53, %v393_v47 }
  0xf2   :  { %v868_v22 = vrot.slane %v860_v20, 1  ;;  %v867_v43 = vrot.slane %v859_v21, 1 }
  0xf3   :  { %v436_v46 = vrot.slane %v428_v12, 1 }
  0xf4   :  { %841 = vrot.lane.b32.xlu1 %v836_v27, %s1548_s16  ;;  %839 = vrot.lane.b32.xlu0 %v835_v28, %s1548_s16  ;;  %v886_v27 = vstv %s1936_s19  ;;  %v455_v28 = vrot.slane %v447_v10, 1  ;;  %s1471_s19 = sld [smem:[#allocation2 + $0x18]] }
  0xf5   :  { %843 = vrot.lane.b32.xlu2 %v837_v19, %s1548_s16  ;;  %v491_v19 = vmul.f32 %v1954_v38, %v1598_v8  ;;  %v887_v41 = vmul.f32 %v886_v27, %v1615_v16  ;;  %v889_v61 = vmul.f32 %v886_v27, %v1621_v17 }
  0xf6   :  { %v388_v51 = vpop.permute.xlu1 %387  ;;  %v386_v52 = vpop.permute.xlu0 %385 }
  0xf7   :  { %v1943_v58 = vadd.f32 %v388_v51, %v1863_v32  ;;  %v395_v40 = vadd.f32 %v386_v52, %v1881_v59  ;;  %v1949_v4 = vpop.permute.xlu2 %601  ;;  %v523_v32 = vrot.slane %v515_v35, 1  ;;  %v1957_v59 = vstv %s1917_s18  ;;  %s1469_s18 = sld [smem:[#allocation2 + $0xf]] }
  0xf8   :  { %v536_v63 = vmul.f32 %v1957_v59, %v1638_v26  ;;  %v472_v35 = vmul.f32 %v1905_v23, %v1621_v17  ;;  %v485_v52 = vadd.f32 %v477_v15, %v441_v56  ;;  %v499_v55 = vrot.slane %v491_v19, 1 }
  0xf9   :  { %v443_v11 = vadd.f32 %v435_v45, %v395_v40  ;;  %v530_v23 = vadd.f32 %v522_v5, %v486_v44  ;;  %v494_v5 = vmul.f32 %v1954_v38, %v1621_v17  ;;  %v897_v34 = vrot.slane %v889_v61, 1 }
  0xfa   :  { %v544_v51 = vrot.slane %v536_v63, 1  ;;  %v493_v17 = vmul.f32 %v2011_v14, %v1954_v38  ;;  %v538_v56 = vmul.f32 %v1957_v59, %v1648_v30  ;;  %v2027_v38 = vld [vmem:[%s2338_s0 + $0x4] sm:$0xf]  ;;  %v2033_v63 = vld [vmem:[%s2338_s0] sm:$0xf] }
  0xfb   :  { %v487_v13 = vadd.f32 %v479_v60, %v443_v11  ;;  %v516_v60 = vmul.f32 %v1912_v33, %v1648_v30  ;;  %v890_v11 = vmul.f32 %v886_v27, %v1648_v30  ;;  %v502_v21 = vrot.slane %v494_v5, 1  ;;  %v2039_v30 = vld [vmem:[%s2338_s0 + $0x18] sm:$0xf] }
  0xfc   :  { %869 = vrot.lane.b32.xlu1 %v865_v62, %s1548_s16  ;;  %845 = vrot.lane.b32.xlu0 %v838_v54, %s1548_s16  ;;  %v480_v62 = vrot.slane %v472_v35, 1  ;;  %v444_v54 = vadd.f32 %v436_v46, %v1943_v58  ;;  %v546_v35 = vrot.slane %v538_v56, 1 }
  0xfd   :  { %v531_v25 = vadd.f32 %v523_v32, %v487_v13  ;;  %871 = vrot.lane.b32.xlu2 %v866_v2, %s1548_s16  ;;  %v524_v32 = vrot.slane %v516_v60, 1  ;;  %v457_v2 = vrot.slane %v449_v57, 1  ;;  %v898_v20 = vrot.slane %v890_v11, 1 }
  0xfe   :  { %v412_v31 = vpop.permute.xlu1 %411  ;;  %v410_v39 = vpop.permute.xlu0 %409  ;;  %v488_v1 = vadd.f32 %v480_v62, %v444_v54 }
  0xff   :  { %v1977_v42 = vadd.f32 %v1907_v9, %v531_v25  ;;  %v1980_v47 = vadd.f32 %v412_v31, %v1872_v48  ;;  %v420_v36 = vadd.f32 %v410_v39, %v1892_v37  ;;  %v630_v45 = vpop.permute.xlu2 %629  ;;  %v450_v9 = vmul.f32 %v446_v50, %v1593_v7 }
 0x100   :  { %v535_v48 = vmul.f32 %v1957_v59, %v1615_v16  ;;  %v895_v37 = vrot.slane %v887_v41, 1  ;;  %v888_v7 = vmul.f32 %v886_v27, %v1638_v26  ;;  %v463_v16 = vadd.f32 %v455_v28, %v1894_v3 }
 0x101   :  { %v464_v8 = vadd.f32 %v456_v6, %v420_v36  ;;  %v529_v50 = vadd.f32 %v521_v24, %v485_v52  ;;  %v458_v49 = vrot.slane %v450_v9, 1  ;;  %v1048_v6 = vstv %s1985_s20  ;;  %s1483_s20 = sld [smem:[#allocation2 + $0x1a]] }
 0x102   :  { %v543_v33 = vrot.slane %v535_v48, 1  ;;  %v896_v12 = vrot.slane %v888_v7, 1  ;;  %v1050_v25 = vmul.f32 %v2027_v38, %v1048_v6  ;;  %v1049_v27 = vmul.f32 %v2033_v63, %v1048_v6 }
 0x103   :  { %v508_v40 = vadd.f32 %v500_v18, %v464_v8  ;;  %v501_v28 = vrot.slane %v493_v17, 1  ;;  %v537_v31 = vmul.f32 %v2039_v30, %v1957_v59  ;;  %v466_v39 = vadd.f32 %v458_v49, %v1909_v29 }
 0x104   :  { %875 = vrot.lane.b32.xlu1 %v868_v22, %s1548_s16  ;;  %873 = vrot.lane.b32.xlu0 %v867_v43, %s1548_s16  ;;  %v465_v24 = vadd.f32 %v457_v2, %v1980_v47  ;;  %v532_v41 = vadd.f32 %v524_v32, %v488_v1  ;;  %v2049_v22 = vld [vmem:[%s2338_s0 + $0x10] sm:$0xf]  ;;  %v1057_v29 = vrot.slane %v1049_v27, 2  ;;  %v1078_v9 = vstv %s2018_s1  ;;  %s2194_s1 = sld [smem:[#allocation2 + $0x33]] }
 0x105   :  { %v552_v0 = vadd.f32 %v544_v51, %v508_v40  ;;  %899 = vrot.lane.b32.xlu2 %v895_v37, %s1548_s16  ;;  %v1051_v43 = vmul.f32 %v2049_v22, %v1048_v6  ;;  %v545_v47 = vrot.slane %v537_v31, 1  ;;  %v510_v51 = vadd.f32 %v502_v21, %v466_v39 }
 0x106   :  { %v572_v10 = vpop.permute.xlu1 %571  ;;  %v570_v53 = vpop.permute.xlu0 %569  ;;  %v509_v52 = vadd.f32 %v501_v28, %v465_v24  ;;  %v1079_v37 = vmul.f32 %v2033_v63, %v1078_v9  ;;  %v1052_v57 = vmul.f32 %v2011_v14, %v1048_v6  ;;  %v1080_v61 = vmul.f32 %v2027_v38, %v1078_v9  ;;  %v2079_v6 = vld [vmem:[%s2338_s0 + $0x8] sm:$0xf] }
 0x107   :  { %v2004_v26 = vadd.f32 %v1949_v4, %v552_v0  ;;  %v2006_v3 = vadd.f32 %v572_v10, %v530_v23  ;;  %v581_v58 = vadd.f32 %v570_v53, %v529_v50  ;;  %v636_v13 = vpop.permute.xlu2 %635  ;;  %v507_v4 = vadd.f32 %v499_v55, %v463_v16 }
 0x108   :  { %v1059_v48 = vrot.slane %v1051_v43, 2  ;;  %v554_v40 = vadd.f32 %v546_v35, %v510_v51  ;;  %v553_v55 = vadd.f32 %v545_v47, %v509_v52  ;;  %v1087_v16 = vrot.slane %v1079_v37, 2 }
 0x109   :  { %v2015_v15 = vadd.f32 %v630_v45, %v581_v58  ;;  %v551_v19 = vadd.f32 %v543_v33, %v507_v4  ;;  %v1058_v45 = vrot.slane %v1050_v25, 2  ;;  %v1060_v54 = vrot.slane %v1052_v57, 2 }
 0x10a   :  { %v1088_v49 = vrot.slane %v1080_v61, 2  ;;  %v1082_v10 = vmul.f32 %v2011_v14, %v1078_v9  ;;  %v1081_v53 = vmul.f32 %v2049_v22, %v1078_v9  ;;  %v1108_v33 = vstv %s1475_s4 }
 0x10b   :  { %v1109_v58 = vmul.f32 %v2027_v38, %v1108_v33  ;;  %v1111_v1 = vmul.f32 %v2011_v14, %v1108_v33  ;;  %v1112_v21 = vmul.f32 %v2039_v30, %v1108_v33  ;;  %v1138_v24 = vstv %s1476_s5 }
 0x10c   :  { %903 = vrot.lane.b32.xlu1 %v897_v34, %s1548_s16  ;;  %901 = vrot.lane.b32.xlu0 %v896_v12, %s1548_s16  ;;  %v1090_v34 = vrot.slane %v1082_v10, 2  ;;  %v1089_v12 = vrot.slane %v1081_v53, 2  ;;  %v1142_v9 = vmul.f32 %v2039_v30, %v1138_v24 }
 0x10d   :  { %905 = vrot.lane.b32.xlu2 %v898_v20, %s1548_s16  ;;  %v1117_v4 = vrot.slane %v1109_v58, 2  ;;  %v1119_v27 = vrot.slane %v1111_v1, 2 }
 0x10e   :  { %v600_v36 = vpop.permute.xlu1 %599  ;;  %v576_v18 = vpop.permute.xlu0 %575 }
 0x10f   :  { %v611_v44 = vadd.f32 %v600_v36, %v551_v19  ;;  %v584_v59 = vadd.f32 %v576_v18, %v532_v41  ;;  %v664_v46 = vpop.permute.xlu2 %663  ;;  %v1120_v19 = vrot.slane %v1112_v21, 2  ;;  %v1140_v41 = vmul.f32 %v2079_v6, %v1138_v24 }
 0x110   :  { %v1139_v36 = vmul.f32 %v2027_v38, %v1138_v24 }
 0x111   :  { %v2052_v8 = vadd.f32 %v636_v13, %v584_v59 }
 0x114   :  { %1063 = vrot.lane.b32.xlu1 %v1058_v45, %s1547_s2  ;;  %1061 = vrot.lane.b32.xlu0 %v1057_v29, %s1547_s2  ;;  %v1148_v45 = vrot.slane %v1140_v41, 2  ;;  %v1147_v29 = vrot.slane %v1139_v36, 2 }
 0x115   :  { %1065 = vrot.lane.b32.xlu2 %v1059_v48, %s1547_s2 }
 0x116   :  { %v606_v60 = vpop.permute.xlu1 %605  ;;  %v604_v23 = vpop.permute.xlu0 %603 }
 0x117   :  { %v614_v7 = vadd.f32 %v606_v60, %v554_v40  ;;  %v613_v62 = vadd.f32 %v604_v23, %v553_v55  ;;  %v692_v0 = vpop.permute.xlu2 %691  ;;  %v1150_v23 = vrot.slane %v1142_v9, 2 }
 0x119   :  { %v2061_v50 = vadd.f32 %v664_v46, %v613_v62  ;;  %v1168_v46 = vstv %s1477_s8 }
 0x11a   :  { %v1169_v52 = vmul.f32 %v2079_v6, %v1168_v46 }
 0x11c   :  { %1091 = vrot.lane.b32.xlu1 %v1087_v16, %s1547_s2  ;;  %1067 = vrot.lane.b32.xlu0 %v1060_v54, %s1547_s2  ;;  %v1177_v60 = vrot.slane %v1169_v52, 2  ;;  %v2115_v16 = vld [vmem:[%s2338_s0 + $0x1c] sm:$0xf] }
 0x11d   :  { %1093 = vrot.lane.b32.xlu2 %v1088_v49, %s1547_s2  ;;  %v1172_v54 = vmul.f32 %v2115_v16, %v1168_v46 }
 0x11e   :  { %v634_v5 = vpop.permute.xlu1 %633  ;;  %v632_v11 = vpop.permute.xlu0 %631 }
 0x11f   :  { %v643_v32 = vadd.f32 %v634_v5, %v1977_v42  ;;  %v642_v2 = vadd.f32 %v632_v11, %v2006_v3  ;;  %v720_v13 = vpop.permute.xlu2 %719  ;;  %v1110_v42 = vmul.f32 %v2079_v6, %v1108_v33  ;;  %v1180_v11 = vrot.slane %v1172_v54, 2 }
 0x121   :  { %v2071_v17 = vadd.f32 %v692_v0, %v642_v2  ;;  %v1118_v28 = vrot.slane %v1110_v42, 2  ;;  %v1198_v0 = vstv %s1478_s9 }
 0x122   :  { %v1199_v53 = vmul.f32 %v2079_v6, %v1198_v0 }
 0x124   :  { %1097 = vrot.lane.b32.xlu1 %v1090_v34, %s1547_s2  ;;  %1095 = vrot.lane.b32.xlu0 %v1089_v12, %s1547_s2  ;;  %v1207_v34 = vrot.slane %v1199_v53, 2  ;;  %v1201_v12 = vmul.f32 %v2039_v30, %v1198_v0 }
 0x125   :  { %1121 = vrot.lane.b32.xlu2 %v1117_v4, %s1547_s2 }
 0x126   :  { %v662_v3 = vpop.permute.xlu1 %661  ;;  %v660_v20 = vpop.permute.xlu0 %659 }
 0x127   :  { %v672_v56 = vadd.f32 %v662_v3, %v2004_v26  ;;  %v671_v25 = vadd.f32 %v660_v20, %v611_v44  ;;  %v726_v31 = vpop.permute.xlu2 %725  ;;  %v1141_v26 = vmul.f32 %v2011_v14, %v1138_v24  ;;  %v1209_v20 = vrot.slane %v1201_v12, 2 }
 0x129   :  { %v2085_v39 = vadd.f32 %v720_v13, %v671_v25  ;;  %v1149_v51 = vrot.slane %v1141_v26, 2 }
 0x12c   :  { %1125 = vrot.lane.b32.xlu1 %v1119_v27, %s1547_s2  ;;  %1123 = vrot.lane.b32.xlu0 %v1118_v28, %s1547_s2 }
 0x12d   :  { %1127 = vrot.lane.b32.xlu2 %v1120_v19, %s1547_s2 }
 0x12e   :  { %v690_v18 = vpop.permute.xlu1 %689  ;;  %v666_v43 = vpop.permute.xlu0 %665 }
 0x12f   :  { %v701_v44 = vadd.f32 %v690_v18, %v2015_v15  ;;  %v674_v59 = vadd.f32 %v666_v43, %v614_v7  ;;  %v754_v35 = vpop.permute.xlu2 %753  ;;  %v2104_v15 = vld [vmem:[%s2338_s0 + $0xc] sm:$0xf]  ;;  %s1479_s0 = sld [smem:[#allocation2 + $0x8]] }
 0x130   :  { %v1170_v57 = vmul.f32 %v2104_v15, %v1168_v46  ;;  %v1200_v13 = vmul.f32 %v2104_v15, %v1198_v0 }
 0x131   :  { %v2094_v47 = vadd.f32 %v726_v31, %v674_v59 }
 0x132   :  { %v1178_v62 = vrot.slane %v1170_v57, 2  ;;  %v1208_v21 = vrot.slane %v1200_v13, 2 }
 0x134   :  { %1153 = vrot.lane.b32.xlu1 %v1148_v45, %s1547_s2  ;;  %1151 = vrot.lane.b32.xlu0 %v1147_v29, %s1547_s2  ;;  %v1258_v45 = vstv %s1480_s14 }
 0x135   :  { %1155 = vrot.lane.b32.xlu2 %v1149_v51, %s1547_s2  ;;  %v1228_v27 = vstv %s1479_s0 }
 0x136   :  { %v696_v48 = vpop.permute.xlu1 %695  ;;  %v694_v37 = vpop.permute.xlu0 %693  ;;  %v1230_v31 = vmul.f32 %v2027_v38, %v1228_v27  ;;  %v1229_v24 = vmul.f32 %v2033_v63, %v1228_v27 }
 0x137   :  { %v704_v40 = vadd.f32 %v696_v48, %v2052_v8  ;;  %v703_v55 = vadd.f32 %v694_v37, %v643_v32  ;;  %v782_v61 = vpop.permute.xlu2 %781  ;;  %v1171_v8 = vmul.f32 %v2039_v30, %v1168_v46  ;;  %v1232_v46 = vmul.f32 %v2011_v14, %v1228_v27 }
 0x138   :  { %v1238_v43 = vrot.slane %v1230_v31, 2  ;;  %v1237_v26 = vrot.slane %v1229_v24, 2  ;;  %v916_v24 = vstv %s1467_s17 }
 0x139   :  { %v2108_v7 = vadd.f32 %v754_v35, %v703_v55  ;;  %v1179_v58 = vrot.slane %v1171_v8, 2  ;;  %v1259_v35 = vmul.f32 %v2033_v63, %v1258_v45  ;;  %v1240_v57 = vrot.slane %v1232_v46, 2 }
 0x13b   :  { %v1267_v37 = vrot.slane %v1259_v35, 2  ;;  %v918_v35 = vmul.f32 %v2027_v38, %v916_v24 }
 0x13c   :  { %1181 = vrot.lane.b32.xlu1 %v1177_v60, %s1547_s2  ;;  %1157 = vrot.lane.b32.xlu0 %v1150_v23, %s1547_s2  ;;  %v1262_v23 = vmul.f32 %v2011_v14, %v1258_v45 }
 0x13d   :  { %1183 = vrot.lane.b32.xlu2 %v1178_v62, %s1547_s2 }
 0x13e   :  { %v724_v49 = vpop.permute.xlu1 %723  ;;  %v722_v10 = vpop.permute.xlu0 %721 }
 0x13f   :  { %v733_v33 = vadd.f32 %v724_v49, %v2061_v50  ;;  %v732_v5 = vadd.f32 %v722_v10, %v672_v56  ;;  %v810_v32 = vpop.permute.xlu2 %809  ;;  %v1202_v50 = vmul.f32 %v2115_v16, %v1198_v0  ;;  %v1270_v10 = vrot.slane %v1262_v23, 2 }
 0x141   :  { %v2122_v2 = vadd.f32 %v782_v61, %v732_v5  ;;  %v1210_v28 = vrot.slane %v1202_v50, 2  ;;  %v1261_v61 = vmul.f32 %v2049_v22, %v1258_v45 }
 0x143   :  { %v1269_v53 = vrot.slane %v1261_v61, 2 }
 0x144   :  { %1187 = vrot.lane.b32.xlu1 %v1180_v11, %s1547_s2  ;;  %1185 = vrot.lane.b32.xlu0 %v1179_v58, %s1547_s2 }
 0x145   :  { %1211 = vrot.lane.b32.xlu2 %v1207_v34, %s1547_s2 }
 0x146   :  { %v752_v4 = vpop.permute.xlu1 %751  ;;  %v750_v1 = vpop.permute.xlu0 %749 }
 0x147   :  { %v762_v42 = vadd.f32 %v752_v4, %v2071_v17  ;;  %v761_v3 = vadd.f32 %v750_v1, %v701_v44  ;;  %v816_v56 = vpop.permute.xlu2 %815  ;;  %v1231_v17 = vmul.f32 %v2049_v22, %v1228_v27 }
 0x149   :  { %v2131_v25 = vadd.f32 %v810_v32, %v761_v3  ;;  %v1239_v29 = vrot.slane %v1231_v17, 2  ;;  %v2182_v17 = vstv %s1469_s18 }
 0x14a   :  { %v2198_v46 = vmul.f32 %v2079_v6, %v2182_v17 }
 0x14c   :  { %1215 = vrot.lane.b32.xlu1 %v1209_v20, %s1547_s2  ;;  %1213 = vrot.lane.b32.xlu0 %v1208_v21, %s1547_s2  ;;  %v1318_v20 = vstv %s1482_s15 }
 0x14d   :  { %1217 = vrot.lane.b32.xlu2 %v1210_v28, %s1547_s2  ;;  %s1481_s2 = sld [smem:[#allocation2 + $0x11]]  ;;  %v1321_v31 = vmul.f32 %v2011_v14, %v1318_v20 }
 0x14e   :  { %v780_v19 = vpop.permute.xlu1 %779  ;;  %v756_v41 = vpop.permute.xlu0 %755 }
 0x14f   :  { %v791_v36 = vadd.f32 %v780_v19, %v2085_v39  ;;  %v764_v18 = vadd.f32 %v756_v41, %v704_v40  ;;  %v844_v44 = vpop.permute.xlu2 %843  ;;  %v1260_v39 = vmul.f32 %v2027_v38, %v1258_v45  ;;  %v2189_v45 = vstv %s1471_s19 }
 0x151   :  { %v2140_v59 = vadd.f32 %v816_v56, %v764_v18  ;;  %v1268_v60 = vrot.slane %v1260_v39, 2  ;;  %v1320_v56 = vmul.f32 %v2079_v6, %v1318_v20  ;;  %v1322_v39 = vmul.f32 %v2039_v30, %v1318_v20 }
 0x153   :  { %v1288_v62 = vstv %s1481_s2 }
 0x154   :  { %1243 = vrot.lane.b32.xlu1 %v1238_v43, %s1548_s16  ;;  %1241 = vrot.lane.b32.xlu0 %v1237_v26, %s1548_s16  ;;  %v1291_v58 = vmul.f32 %v2011_v14, %v1288_v62  ;;  %v1290_v32 = vmul.f32 %v2079_v6, %v1288_v62  ;;  %v1292_v12 = vmul.f32 %v2039_v30, %v1288_v62 }
 0x155   :  { %1245 = vrot.lane.b32.xlu2 %v1239_v29, %s1548_s16  ;;  %v1348_v29 = vstv %s1483_s20 }
 0x156   :  { %v786_v51 = vpop.permute.xlu1 %785  ;;  %v784_v52 = vpop.permute.xlu0 %783  ;;  %v1299_v1 = vrot.slane %v1291_v58, 2  ;;  %v1298_v50 = vrot.slane %v1290_v32, 2  ;;  %v1300_v21 = vrot.slane %v1292_v12, 2 }
 0x157   :  { %v794_v9 = vadd.f32 %v786_v51, %v2094_v47  ;;  %v793_v48 = vadd.f32 %v784_v52, %v733_v33  ;;  %v872_v40 = vpop.permute.xlu2 %871  ;;  %v1289_v47 = vmul.f32 %v2027_v38, %v1288_v62  ;;  %v963_v51 = vmul.f32 %v2011_v14, %v2182_v17 }
 0x158   :  { %v1349_v52 = vmul.f32 %v2079_v6, %v1348_v29  ;;  %v970_v62 = vrot.slane %v2198_v46, 2 }
 0x159   :  { %v2149_v55 = vadd.f32 %v844_v44, %v793_v48  ;;  %v1297_v11 = vrot.slane %v1289_v47, 2  ;;  %v919_v44 = vmul.f32 %v2049_v22, %v916_v24  ;;  %v917_v48 = vmul.f32 %v2033_v63, %v916_v24 }
 0x15c   :  { %1271 = vrot.lane.b32.xlu1 %v1267_v37, %s1548_s16  ;;  %1247 = vrot.lane.b32.xlu0 %v1240_v57, %s1548_s16  ;;  %v927_v37 = vrot.slane %v919_v44, 2  ;;  %v1007_v57 = vmul.f32 %v2039_v30, %v2189_v45 }
 0x15d   :  { %1273 = vrot.lane.b32.xlu2 %v1268_v60, %s1548_s16  ;;  %v938_v60 = vstv %s2177_s21 }
 0x15e   :  { %v814_v54 = vpop.permute.xlu1 %813  ;;  %v812_v8 = vpop.permute.xlu0 %811 }
 0x15f   :  { %v2158_v0 = vadd.f32 %v814_v54, %v2108_v7  ;;  %v822_v49 = vadd.f32 %v812_v8, %v762_v42  ;;  %v900_v33 = vpop.permute.xlu2 %899  ;;  %v1350_v54 = vmul.f32 %v2104_v15, %v1348_v29 }
 0x161   :  { %v2160_v5 = vadd.f32 %v872_v40, %v822_v49  ;;  %v926_v40 = vrot.slane %v918_v35, 2  ;;  %v971_v49 = vrot.slane %v963_v51, 2 }
 0x164   :  { %1277 = vrot.lane.b32.xlu1 %v1270_v10, %s1548_s16  ;;  %1275 = vrot.lane.b32.xlu0 %v1269_v53, %s1548_s16  ;;  %v961_v10 = vmul.f32 %v2027_v38, %v2182_v17  ;;  %v1357_v53 = vrot.slane %v1349_v52, 2 }
 0x165   :  { %1301 = vrot.lane.b32.xlu2 %v1297_v11, %s1548_s16  ;;  %v940_v11 = vmul.f32 %v2027_v38, %v938_v60 }
 0x166   :  { %v842_v34 = vpop.permute.xlu1 %841  ;;  %v840_v7 = vpop.permute.xlu0 %839 }
 0x167   :  { %v2169_v13 = vadd.f32 %v842_v34, %v2122_v2  ;;  %v851_v4 = vadd.f32 %v840_v7, %v791_v36  ;;  %v906_v42 = vpop.permute.xlu2 %905  ;;  %v1319_v2 = vmul.f32 %v2027_v38, %v1318_v20  ;;  %v1328_v36 = vrot.slane %v1320_v56, 2 }
 0x168   :  { %v939_v34 = vmul.f32 %v2033_v63, %v938_v60  ;;  %v925_v7 = vrot.slane %v917_v48, 2  ;;  %v969_v56 = vrot.slane %v961_v10, 2  ;;  %v934_v63 = vadd.f32 %v926_v40, %v2160_v5 }
 0x169   :  { %v2171_v3 = vadd.f32 %v900_v33, %v851_v4  ;;  %v1327_v18 = vrot.slane %v1319_v2, 2  ;;  %v1330_v33 = vrot.slane %v1322_v39, 2  ;;  %v2231_v4 = vstv %s2191_s22 }
 0x16a   :  { %v948_v2 = vrot.slane %v940_v11, 2  ;;  %v978_v48 = vadd.f32 %v970_v62, %v934_v63  ;;  %v1008_v62 = vmul.f32 %v2115_v16, %v2189_v45 }
 0x16c   :  { %1305 = vrot.lane.b32.xlu1 %v1299_v1, %s1548_s16  ;;  %1303 = vrot.lane.b32.xlu0 %v1298_v50, %s1548_s16  ;;  %v1358_v1 = vrot.slane %v1350_v54, 2  ;;  %v1005_v50 = vmul.f32 %v2079_v6, %v2189_v45  ;;  %v942_v54 = vmul.f32 %v2011_v14, %v938_v60 }
 0x16d   :  { %1307 = vrot.lane.b32.xlu2 %v1300_v21, %s1548_s16  ;;  %v984_v21 = vmul.f32 %v2079_v6, %v2231_v4 }
 0x16e   :  { %v870_v27 = vpop.permute.xlu1 %869  ;;  %v846_v28 = vpop.permute.xlu0 %845  ;;  %v1013_v5 = vrot.slane %v1005_v50, 2 }
 0x16f   :  { %v881_v19 = vadd.f32 %v870_v27, %v2131_v25  ;;  %v854_v41 = vadd.f32 %v846_v28, %v794_v9  ;;  %v2184_v43 = vpop.permute.xlu2 %1065  ;;  %v1329_v25 = vrot.slane %v1321_v31, 2  ;;  %v2208_v9 = vmul.f32 %v2104_v15, %v2189_v45 }
 0x170   :  { %v1352_v27 = vmul.f32 %v2115_v16, %v1348_v29  ;;  %v1351_v28 = vmul.f32 %v2039_v30, %v1348_v29  ;;  %v992_v52 = vrot.slane %v984_v21, 2  ;;  %v985_v21 = vmul.f32 %v2011_v14, %v2231_v4 }
 0x171   :  { %v2186_v26 = vadd.f32 %v906_v42, %v854_v41  ;;  %v1014_v32 = vrot.slane %v2208_v9, 2  ;;  %v920_v42 = vmul.f32 %v2011_v14, %v916_v24  ;;  %v933_v31 = vadd.f32 %v925_v7, %v881_v19 }
 0x172   :  { %v1360_v39 = vrot.slane %v1352_v27, 2  ;;  %v1359_v9 = vrot.slane %v1351_v28, 2 }
 0x173   :  { %v928_v40 = vrot.slane %v920_v42, 2  ;;  %v1016_v42 = vrot.slane %v1008_v62, 2 }
 0x174   :  { %1333 = vrot.lane.b32.xlu1 %v1328_v36, %s1548_s16  ;;  %1331 = vrot.lane.b32.xlu0 %v1327_v18, %s1548_s16  ;;  %v1378_v36 = vstv %s2213_s23  ;;  %v947_v18 = vrot.slane %v939_v34, 2  ;;  %v950_v34 = vrot.slane %v942_v54, 2 }
 0x175   :  { %1335 = vrot.lane.b32.xlu2 %v1329_v25, %s1548_s16  ;;  %v983_v25 = vmul.f32 %v2027_v38, %v2231_v4  ;;  %v1379_v46 = vmul.f32 %v2079_v6, %v1378_v36  ;;  %v1381_v10 = vmul.f32 %v2039_v30, %v1378_v36 }
 0x176   :  { %v876_v23 = vpop.permute.xlu1 %875  ;;  %v874_v61 = vpop.permute.xlu0 %873  ;;  %v958_v14 = vadd.f32 %v950_v34, %v2186_v26 }
 0x177   :  { %v2220_v8 = vadd.f32 %v876_v23, %v2140_v59  ;;  %v883_v47 = vadd.f32 %v874_v61, %v2158_v0  ;;  %v2226_v58 = vpop.permute.xlu2 %1093  ;;  %v1015_v59 = vrot.slane %v1007_v57, 2  ;;  %v2234_v0 = vstv %s2194_s1 }
 0x178   :  { %v1028_v24 = vmul.f32 %v2104_v15, %v2234_v0  ;;  %v964_v57 = vmul.f32 %v2039_v30, %v2182_v17  ;;  %v977_v61 = vadd.f32 %v969_v56, %v933_v31  ;;  %v1022_v17 = vadd.f32 %v1014_v32, %v978_v48 }
 0x179   :  { %v935_v12 = vadd.f32 %v927_v37, %v883_v47  ;;  %v936_v11 = vadd.f32 %v928_v40, %v2220_v8  ;;  %v1389_v50 = vrot.slane %v1381_v10, 2  ;;  %v1030_v31 = vmul.f32 %v2115_v16, %v2234_v0 }
 0x17a   :  { %v1036_v38 = vrot.slane %v1028_v24, 2  ;;  %v1029_v24 = vmul.f32 %v2039_v30, %v2234_v0 }
 0x17b   :  { %v979_v20 = vadd.f32 %v971_v49, %v935_v12  ;;  %v991_v49 = vrot.slane %v983_v25, 2 }
 0x17c   :  { %1361 = vrot.lane.b32.xlu1 %v1357_v53, %s1548_s16  ;;  %1337 = vrot.lane.b32.xlu0 %v1330_v33, %s1548_s16  ;;  %v1380_v53 = vmul.f32 %v2104_v15, %v1378_v36  ;;  %v972_v33 = vrot.slane %v964_v57, 2 }
 0x17d   :  { %v1023_v41 = vadd.f32 %v1015_v59, %v979_v20  ;;  %1363 = vrot.lane.b32.xlu2 %v1358_v1, %s1548_s16  ;;  %v1382_v59 = vmul.f32 %v2115_v16, %v1378_v36 }
 0x17e   :  { %v904_v44 = vpop.permute.xlu1 %903  ;;  %v902_v35 = vpop.permute.xlu0 %901  ;;  %v1388_v8 = vrot.slane %v1380_v53, 2  ;;  %v980_v27 = vadd.f32 %v972_v33, %v936_v11 }
 0x17f   :  { %v2254_v51 = vadd.f32 %v2184_v43, %v1023_v41  ;;  %v913_v19 = vadd.f32 %v904_v44, %v2149_v55  ;;  %v912_v29 = vadd.f32 %v902_v35, %v2169_v13  ;;  %v1122_v37 = vpop.permute.xlu2 %1121  ;;  %v1027_v43 = vmul.f32 %v2079_v6, %v2234_v0 }
 0x180   :  { %v1387_v55 = vrot.slane %v1379_v46, 2  ;;  %v941_v13 = vmul.f32 %v2049_v22, %v938_v60  ;;  %v955_v6 = vadd.f32 %v947_v18, %v2171_v3  ;;  %v1021_v60 = vadd.f32 %v1013_v5, %v977_v61 }
 0x181   :  { %v956_v23 = vadd.f32 %v948_v2, %v912_v29  ;;  %v1035_v45 = vrot.slane %v1027_v43, 2  ;;  %v986_v3 = vmul.f32 %v2039_v30, %v2231_v4  ;;  %v1390_v28 = vrot.slane %v1382_v59, 2 }
 0x182   :  { %v949_v56 = vrot.slane %v941_v13, 2  ;;  %v999_v2 = vadd.f32 %v991_v49, %v955_v6  ;;  %v993_v41 = vrot.slane %v985_v21, 2  ;;  %v1024_v18 = vadd.f32 %v1016_v42, %v980_v27 }
 0x183   :  { %v1000_v47 = vadd.f32 %v992_v52, %v956_v23  ;;  %v1038_v46 = vrot.slane %v1030_v31, 2 }
 0x184   :  { %1367 = vrot.lane.b32.xlu1 %v1360_v39, %s1548_s16  ;;  %1365 = vrot.lane.b32.xlu0 %v1359_v9, %s1548_s16  ;;  %v957_v4 = vadd.f32 %v949_v56, %v913_v19  ;;  %v1043_v36 = vadd.f32 %v1035_v45, %v999_v2  ;;  %v1037_v9 = vrot.slane %v1029_v24, 2 }
 0x185   :  { %v1044_v22 = vadd.f32 %v1036_v38, %v1000_v47  ;;  %1391 = vrot.lane.b32.xlu2 %v1387_v55, %s1548_s16 }
 0x186   :  { %v1064_v7 = vpop.permute.xlu1 %1063  ;;  %v1062_v12 = vpop.permute.xlu0 %1061  ;;  %v1001_v39 = vadd.f32 %v993_v41, %v957_v4 }
 0x187   :  { %v1104_v32 = vadd.f32 %v2226_v58, %v1044_v22  ;;  %v2275_v1 = vadd.f32 %v1064_v7, %v1022_v17  ;;  %v1073_v15 = vadd.f32 %v1062_v12, %v1021_v60  ;;  %v1128_v20 = vpop.permute.xlu2 %1127  ;;  %v994_v58 = vrot.slane %v986_v3, 2 }
 0x188   :  { %v1045_v30 = vadd.f32 %v1037_v9, %v1001_v39 }
 0x189   :  { %v2281_v63 = vadd.f32 %v1122_v37, %v1073_v15  ;;  %v1002_v16 = vadd.f32 %v994_v58, %v958_v14 }
 0x18b   :  { %v1046_v48 = vadd.f32 %v1038_v46, %v1002_v16 }
 0x18c   :  { %1395 = vrot.lane.b32.xlu1 %v1389_v50, %s1548_s16  ;;  %1393 = vrot.lane.b32.xlu0 %v1388_v8, %s1548_s16 }
 0x18d   :  { %1397 = vrot.lane.b32.xlu2 %v1390_v28, %s1548_s16 }
 0x18e   :  { %v1092_v44 = vpop.permute.xlu1 %1091  ;;  %v1068_v35 = vpop.permute.xlu0 %1067 }
 0x18f   :  { %v1103_v5 = vadd.f32 %v1092_v44, %v1043_v36  ;;  %v1076_v25 = vadd.f32 %v1068_v35, %v1024_v18  ;;  %v1156_v29 = vpop.permute.xlu2 %1155 }
 0x191   :  { %v2291_v52 = vadd.f32 %v1128_v20, %v1076_v25 }
 0x196   :  { %v1098_v0 = vpop.permute.xlu1 %1097  ;;  %v1096_v26 = vpop.permute.xlu0 %1095 }
 0x197   :  { %v1106_v19 = vadd.f32 %v1098_v0, %v1046_v48  ;;  %v1105_v37 = vadd.f32 %v1096_v26, %v1045_v30  ;;  %v1184_v57 = vpop.permute.xlu2 %1183 }
 0x199   :  { %v2293_v40 = vadd.f32 %v1156_v29, %v1105_v37 }
 0x19e   :  { %v1126_v23 = vpop.permute.xlu1 %1125  ;;  %v1124_v38 = vpop.permute.xlu0 %1123 }
 0x19f   :  { %v1135_v61 = vadd.f32 %v1126_v23, %v2254_v51  ;;  %v1212_v54 = vpop.permute.xlu2 %1211  ;;  %v1134_v15 = vadd.f32 %v1124_v38, %v2275_v1 }
 0x1a1   :  { %v1194_v50 = vadd.f32 %v1184_v57, %v1134_v15 }
 0x1a6   :  { %v1154_v43 = vpop.permute.xlu1 %1153  ;;  %v1152_v55 = vpop.permute.xlu0 %1151 }
 0x1a7   :  { %v2296_v13 = vadd.f32 %v1154_v43, %v1104_v32  ;;  %v1218_v47 = vpop.permute.xlu2 %1217  ;;  %v1163_v21 = vadd.f32 %v1152_v55, %v1103_v5 }
 0x1a9   :  { %v1223_v27 = vadd.f32 %v1212_v54, %v1163_v21 }
 0x1ae   :  { %v1182_v49 = vpop.permute.xlu1 %1181  ;;  %v1158_v62 = vpop.permute.xlu0 %1157 }
 0x1af   :  { %v1246_v17 = vpop.permute.xlu2 %1245  ;;  %v1193_v24 = vadd.f32 %v1182_v49, %v2281_v63  ;;  %v1166_v14 = vadd.f32 %v1158_v62, %v1106_v19 }
 0x1b1   :  { %v1226_v44 = vadd.f32 %v1218_v47, %v1166_v14 }
 0x1b6   :  { %v1188_v10 = vpop.permute.xlu1 %1187  ;;  %v1186_v53 = vpop.permute.xlu0 %1185 }
 0x1b7   :  { %v2298_v33 = vpop.permute.xlu2 %1273  ;;  %v1196_v63 = vadd.f32 %v1188_v10, %v2291_v52  ;;  %v1195_v16 = vadd.f32 %v1186_v53, %v1135_v61 }
 0x1b9   :  { %v1255_v26 = vadd.f32 %v1246_v17, %v1195_v16 }
 0x1be   :  { %v1216_v6 = vpop.permute.xlu1 %1215  ;;  %v1214_v11 = vpop.permute.xlu0 %1213 }
 0x1bf   :  { %v1302_v22 = vpop.permute.xlu2 %1301  ;;  %v1225_v52 = vadd.f32 %v1216_v6, %v2293_v40  ;;  %v1224_v61 = vadd.f32 %v1214_v11, %v2296_v13 }
 0x1c1   :  { %v1284_v40 = vadd.f32 %v2298_v33, %v1224_v61 }
 0x1c6   :  { %v1244_v60 = vpop.permute.xlu1 %1243  ;;  %v1242_v34 = vpop.permute.xlu0 %1241 }
 0x1c7   :  { %v1308_v7 = vpop.permute.xlu2 %1307  ;;  %v1254_v8 = vadd.f32 %v1244_v60, %v1194_v50  ;;  %v1253_v36 = vadd.f32 %v1242_v34, %v1193_v24 }
 0x1c9   :  { %v1313_v35 = vadd.f32 %v1302_v22, %v1253_v36 }
 0x1ce   :  { %v1272_v51 = vpop.permute.xlu1 %1271  ;;  %v1248_v12 = vpop.permute.xlu0 %1247 }
 0x1cf   :  { %v1336_v45 = vpop.permute.xlu2 %1335  ;;  %v1283_v58 = vadd.f32 %v1272_v51, %v1223_v27  ;;  %v1256_v30 = vadd.f32 %v1248_v12, %v1196_v63 }
 0x1d1   :  { %v1316_v19 = vadd.f32 %v1308_v7, %v1256_v30 }
 0x1d6   :  { %v1278_v59 = vpop.permute.xlu1 %1277  ;;  %v1276_v32 = vpop.permute.xlu0 %1275 }
 0x1d7   :  { %v1364_v3 = vpop.permute.xlu2 %1363  ;;  %v1286_v5 = vadd.f32 %v1278_v59, %v1226_v44  ;;  %v1285_v47 = vadd.f32 %v1276_v32, %v1225_v52 }
 0x1d9   :  { %v1345_v49 = vadd.f32 %v1336_v45, %v1285_v47 }
 0x1de   :  { %v1306_v42 = vpop.permute.xlu1 %1305  ;;  %v1304_v20 = vpop.permute.xlu0 %1303 }
 0x1df   :  { %v1314_v56 = vadd.f32 %v1304_v20, %v1254_v8  ;;  %v1392_v28 = vpop.permute.xlu2 %1391  ;;  %v1315_v37 = vadd.f32 %v1306_v42, %v1255_v26 }
 0x1e1   :  { %v1374_v2 = vadd.f32 %v1364_v3, %v1314_v56 }
 0x1e3   :  { %1493 = vtanh.f32 %v1374_v2 }
 0x1e6   :  { %v1334_v31 = vpop.permute.xlu1 %1333  ;;  %v1332_v41 = vpop.permute.xlu0 %1331 }
 0x1e7   :  { %v1343_v4 = vadd.f32 %v1332_v41, %v1283_v58  ;;  %v1398_v25 = vpop.permute.xlu2 %1397  ;;  %v1344_v13 = vadd.f32 %v1334_v31, %v1284_v40 }
 0x1e9   :  { %v1494_v1 = vpop.eup %1493  ;;  %v1403_v18 = vadd.f32 %v1392_v28, %v1343_v4 }
 0x1ea   :  { %1413 = vst.msk [vmem:[%s2341_s3 + $0x2] sm:$0x3] %vm1411_vm0, %v1494_v1 }
 0x1eb   :  { %1495 = vtanh.f32 %v1403_v18 }
 0x1ee   :  { %v1362_v46 = vpop.permute.xlu1 %1361  ;;  %v1338_v29 = vpop.permute.xlu0 %1337 }
 0x1ef   :  { %v1373_v39 = vadd.f32 %v1362_v46, %v1313_v35  ;;  %v1346_v9 = vadd.f32 %v1338_v29, %v1286_v5 }
 0x1f1   :  { %v1496_v48 = vpop.eup %1495  ;;  %1497 = vtanh.f32 %v1373_v39  ;;  %v1406_v0 = vadd.f32 %v1398_v25, %v1346_v9 }
 0x1f2   :  { %1485 = vst.msk [vmem:[%s2341_s3 + $0x4] sm:$0x3] %vm1411_vm0, %v1496_v48 }
 0x1f3   :  { %1499 = vtanh.f32 %v1406_v0 }
 0x1f6   :  { %v1368_v57 = vpop.permute.xlu1 %1367  ;;  %v1366_v23 = vpop.permute.xlu0 %1365 }
 0x1f7   :  { %v1498_v38 = vpop.eup %1497  ;;  %v1376_v54 = vadd.f32 %v1368_v57, %v1316_v19  ;;  %v1375_v43 = vadd.f32 %v1366_v23, %v1315_v37 }
 0x1f8   :  { %1412 = vst.msk [vmem:[%s2341_s3] sm:$0x3] %vm1411_vm0, %v1498_v38 }
 0x1f9   :  { %v1500_v55 = vpop.eup %1499  ;;  %1501 = vtanh.f32 %v1376_v54 }
 0x1fa   :  { %1488 = vst.msk [vmem:[%s2341_s3 + $0xe] sm:$0x3] %vm1411_vm0, %v1500_v55  ;;  %1503 = vtanh.f32 %v1375_v43 }
 0x1fe   :  { %v1396_v62 = vpop.permute.xlu1 %1395  ;;  %v1394_v17 = vpop.permute.xlu0 %1393 }
 0x1ff   :  { %v1502_v10 = vpop.eup %1501  ;;  %v1405_v53 = vadd.f32 %v1396_v62, %v1345_v49  ;;  %v1404_v6 = vadd.f32 %v1394_v17, %v1344_v13 }
 0x200   :  { %v1504_v11 = vpop.eup %1503  ;;  %1415 = vst.msk [vmem:[%s2341_s3 + $0xa] sm:$0x3] %vm1411_vm0, %v1502_v10 }
 0x201   :  { %1414 = vst.msk [vmem:[%s2341_s3 + $0x8] sm:$0x3] %vm1411_vm0, %v1504_v11  ;;  %1505 = vtanh.f32 %v1405_v53 }
 0x202   :  { %1507 = vtanh.f32 %v1404_v6 }
 0x207   :  { %v1506_v33 = vpop.eup %1505 }
 0x208   :  { %v1508_v22 = vpop.eup %1507  ;;  %1487 = vst.msk [vmem:[%s2341_s3 + $0xc] sm:$0x3] %vm1411_vm0, %v1506_v33 }
 0x209   :  { %1486 = vst.msk [vmem:[%s2341_s3 + $0x6] sm:$0x3] %vm1411_vm0, %v1508_v22 }
 0x20a   :  { %1429 = vsyncpa [#allocation3], 1 }
 0x20b   :  { %1430 = vsyncpa [#allocation5], 1 }

</bundles_post_ra>
